<compile_context>
chip_gen: v5e
topology: v5e:2x2
jax: 0.10.0
libtpu: 0.0.40
codegen_flags: <defaults>
</compile_context>

<pallas_src>
import functools

import jax
import jax.numpy as jnp
from jax.experimental import pallas as pl
from jax.experimental.pallas import tpu as pltpu


def gru_seq_kernel(gi_ref,      # (S_pad, 3H) f32  pre-projected inputs  [r|z|n]
                   whh_ref,     # (H, 3H)     f32  W_hh^T, gates fused   [r|z|n]
                   bhn_ref,     # (1, H)      f32  b_hn (n-gate hidden bias)
                   h0_ref,      # (1, H)      f32  initial hidden state
                   out_ref,     # (S_pad, H)  f32  h_t rows (padded slab)
                   *, seq_len, hidden_size):
    """Whole-sequence GRU recurrence in a single kernel invocation."""
    H = hidden_size

    # One full-slab zero store: covers sublane-padding rows; the HBM writeback
    # of out_ref happens exactly once, at kernel end.
    out_ref[...] = jnp.zeros_like(out_ref)

    whh = whh_ref[...]          # VMEM-resident for the entire recurrence
    bhn = bhn_ref[...]
    h = h0_ref[...]             # (1, H) f32, carried in vregs across steps

    # seq_len is a trace-time constant -> fully unrolled recurrence, no
    # per-step grid/pipeline overhead.  Only the h-side matmul + gate math
    # remain on the serial critical path.
    for t in range(seq_len):
        gi = gi_ref[t:t + 1, :]                                    # (1, 3H)
        gh = jnp.dot(h, whh, preferred_element_type=jnp.float32)   # (1, 3H)

        # torch.nn.GRU gate order: r | z | n
        r = jax.nn.sigmoid(gi[:, 0 * H:1 * H] + gh[:, 0 * H:1 * H])
        z = jax.nn.sigmoid(gi[:, 1 * H:2 * H] + gh[:, 1 * H:2 * H])
        n = jnp.tanh(gi[:, 2 * H:3 * H] + r * (gh[:, 2 * H:3 * H] + bhn))
        h = (1.0 - z) * n + z * h

        out_ref[t:t + 1, :] = h


def _round_up(x, m):
    return ((x + m - 1) // m) * m


@functools.partial(jax.jit, static_argnames=("hidden_size",))
def encoder_rnn_forward(tokens, hidden, params, *, hidden_size):
    """Mirrors EncoderRNN.forward; processes the whole token sequence in one call.

    tokens : int32 scalar or (S,)   token ids
    hidden : (1, 1, H) float32      initial hidden state
    returns (output, h_n) with shapes (S, 1, H) and (1, 1, H).
    For S == 1 this is exactly the original module's forward().
    """
    H = hidden_size
    gi_table = params["gi_table"]      # (V, 3H) f32: emb @ W_ih^T + fused biases
    whh = params["w_hh_t"]             # (H, 3H) f32
    bhn = params["b_hn"]               # (1, H)  f32
    V = gi_table.shape[0]

    # NOTE: out-of-range ids are clamped (torch.nn.Embedding would error).
    toks = jnp.clip(jnp.reshape(tokens, (-1,)).astype(jnp.int32), 0, V - 1)
    S = toks.shape[0]                          # static under jit
    S_pad = max(8, _round_up(S, 8))            # (8,128)-aligned output slab

    # Input projection has no recurrence -> one gather off the serial path.
    gi_all = jnp.take(gi_table, toks, axis=0)                  # (S, 3H)
    gi_all = jnp.pad(gi_all, ((0, S_pad - S), (0, 0)))          # (S_pad, 3H)

    h0 = jnp.reshape(hidden, (1, H)).astype(jnp.float32)

    kernel = functools.partial(gru_seq_kernel, seq_len=S, hidden_size=H)
    out = pl.pallas_call(
        kernel,
        out_shape=jax.ShapeDtypeStruct((S_pad, H), jnp.float32),
        in_specs=[
            # Single-invocation kernel: whole arrays resident in VMEM, each
            # DMA'd exactly once (no pipelining / double-buffering needed).
            pl.BlockSpec(memory_space=pltpu.MemorySpace.VMEM),   # gi_all
            pl.BlockSpec(memory_space=pltpu.MemorySpace.VMEM),   # W_hh^T
            pl.BlockSpec(memory_space=pltpu.MemorySpace.VMEM),   # b_hn
            pl.BlockSpec(memory_space=pltpu.MemorySpace.VMEM),   # h0
        ],
        out_specs=pl.BlockSpec(memory_space=pltpu.MemorySpace.VMEM),
        compiler_params=pltpu.CompilerParams(
            vmem_limit_bytes=32 * 1024 * 1024),
    )(gi_all, whh, bhn, h0)

    output = out[:S].reshape(S, 1, H)          # (seq_len, batch=1, H)
    h_n = out[S - 1].reshape(1, 1, H)          # (num_layers*dirs=1, batch=1, H)
    return output, h_n


def init_params(key, input_size, hidden_size):
    """Deterministic params matching the PyTorch module's shapes/layout."""
    H = hidden_size
    k_emb, k_wih, k_whh, k_bih, k_bhh = jax.random.split(key, 5)
    bound = 1.0 / jnp.sqrt(jnp.float32(H))

    # torch layouts: embedding (V,H) ~ N(0,1); weight_ih_l0/weight_hh_l0 are
    # (3H, H), biases (3H,), uniform(-1/sqrt(H), 1/sqrt(H)); gate order r,z,n.
    emb = jax.random.normal(k_emb, (input_size, H), jnp.float32)
    w_ih = jax.random.uniform(k_wih, (3 * H, H), jnp.float32, -bound, bound)
    w_hh = jax.random.uniform(k_whh, (3 * H, H), jnp.float32, -bound, bound)
    b_ih = jax.random.uniform(k_bih, (3 * H,), jnp.float32, -bound, bound)
    b_hh = jax.random.uniform(k_bhh, (3 * H,), jnp.float32, -bound, bound)

    # Offline fold: gi_table[v] = emb[v] @ W_ih^T + [b_ir+b_hr | b_iz+b_hz | b_in]
    # (exact affine commutation; turns the per-step input side into a row gather).
    b_i_fused = jnp.concatenate([
        b_ih[0 * H:1 * H] + b_hh[0 * H:1 * H],
        b_ih[1 * H:2 * H] + b_hh[1 * H:2 * H],
        b_ih[2 * H:3 * H],
    ])
    gi_table = jnp.dot(emb, w_ih.T,
                       precision=jax.lax.Precision.HIGHEST) + b_i_fused[None, :]

    return {
        # kernel-side params
        "gi_table": gi_table,                       # (V, 3H) f32
        "w_hh_t": jnp.transpose(w_hh),              # (H, 3H) f32
        "b_hn": b_hh[2 * H:3 * H].reshape(1, H),    # (1, H)  f32
        # raw torch-layout params (used by the pure-JAX reference)
        "embedding": emb, "w_ih": w_ih, "w_hh": w_hh,
        "b_ih": b_ih, "b_hh": b_hh,
    }


def reference_forward(tokens, hidden, params, hidden_size):
    """Pure-JAX f32 reference of torch.nn.Embedding + torch.nn.GRU (batch=1)."""
    H = hidden_size
    emb, w_ih, w_hh = params["embedding"], params["w_ih"], params["w_hh"]
    b_ih, b_hh = params["b_ih"], params["b_hh"]
    hp = jax.lax.Precision.HIGHEST

    toks = jnp.reshape(tokens, (-1,)).astype(jnp.int32)
    h = jnp.reshape(hidden, (1, H)).astype(jnp.float32)
    outs = []
    for t in range(int(toks.shape[0])):
        x = emb[toks[t]].reshape(1, H)
        gi = jnp.dot(x, w_ih.T, precision=hp) + b_ih[None, :]
        gh = jnp.dot(h, w_hh.T, precision=hp) + b_hh[None, :]
        r = jax.nn.sigmoid(gi[:, :H] + gh[:, :H])
        z = jax.nn.sigmoid(gi[:, H:2 * H] + gh[:, H:2 * H])
        n = jnp.tanh(gi[:, 2 * H:] + r * gh[:, 2 * H:])
        h = (1.0 - z) * n + z * h
        outs.append(h)
    out = jnp.stack(outs, axis=0).reshape(-1, 1, H)
    return out, h.reshape(1, 1, H)


if __name__ == "__main__":
    VOCAB = 16       # input_size (vocabulary)
    HIDDEN = 128     # hidden_size: multiple of 128 -> lane-dense gates/output
    SEQ = 8          # encoder steps folded into one kernel invocation

    key = jax.random.PRNGKey(0)
    k_params, k_tok, k_hid = jax.random.split(key, 3)

    params = init_params(k_params, VOCAB, HIDDEN)
    tokens = jax.random.randint(k_tok, (SEQ,), 0, VOCAB, dtype=jnp.int32)
    hidden0 = jax.random.normal(k_hid, (1, 1, HIDDEN), jnp.float32)

    # Multi-token encode (whole sequence in one pallas_call).
    out, h_n = encoder_rnn_forward(tokens, hidden0, params, hidden_size=HIDDEN)
    out = jax.block_until_ready(out)
    h_n = jax.block_until_ready(h_n)

    ref_out, ref_h = reference_forward(tokens, hidden0, params, HIDDEN)
    assert out.shape == (SEQ, 1, HIDDEN) and h_n.shape == (1, 1, HIDDEN)
    # f32 end-to-end; typical error ~1e-5.  The slack only covers potential
    # reduced-precision MXU passes for f32 operands on some generations.
    assert jnp.allclose(out, ref_out, atol=1e-2, rtol=1e-2), "output mismatch"
    assert jnp.allclose(h_n, ref_h, atol=1e-2, rtol=1e-2), "hidden mismatch"

    # Single-token call == exact semantics of EncoderRNN.forward(input, hidden).
    out1, h1 = encoder_rnn_forward(tokens[0], hidden0, params,
                                   hidden_size=HIDDEN)
    out1 = jax.block_until_ready(out1)
    ref_out1, ref_h1 = reference_forward(tokens[0], hidden0, params, HIDDEN)
    assert out1.shape == (1, 1, HIDDEN) and h1.shape == (1, 1, HIDDEN)
    assert jnp.allclose(out1, ref_out1, atol=1e-2, rtol=1e-2)
    assert jnp.allclose(h1, ref_h1, atol=1e-2, rtol=1e-2)

    print("KERNEL_OK")
</pallas_src>

<mosaic_0001>
module attributes {stable_mosaic.version = 11 : i64} {
  func.func @gru_seq_kernel(%arg0: memref<8x384xf32, #tpu.memory_space<vmem>>, %arg1: memref<128x384xf32, #tpu.memory_space<vmem>>, %arg2: memref<1x128xf32, #tpu.memory_space<vmem>>, %arg3: memref<1x128xf32, #tpu.memory_space<vmem>>, %arg4: memref<8x128xf32, #tpu.memory_space<vmem>>) attributes {dimension_semantics = [], scalar_prefetch = 0 : i64, scratch_operands = 0 : i64, tpu.core_type = #tpu.core_type<tc>} {
    %cst = arith.constant 0.000000e+00 : f32
    %0 = vector.broadcast %cst : f32 to vector<8x128xf32>
    %c0 = arith.constant 0 : index
    %c0_0 = arith.constant 0 : index
    %1 = vector.load %arg4[%c0, %c0_0] : memref<8x128xf32, #tpu.memory_space<vmem>>, vector<8x128xf32>
    tpu.vector_store %arg4[%c0, %c0_0], %0 {strides = array<i32>} : memref<8x128xf32, #tpu.memory_space<vmem>>, vector<8x128xf32>,
    %c0_1 = arith.constant 0 : index
    %c0_2 = arith.constant 0 : index
    %2 = vector.load %arg1[%c0_1, %c0_2] : memref<128x384xf32, #tpu.memory_space<vmem>>, vector<128x384xf32>
    %c0_3 = arith.constant 0 : index
    %c0_4 = arith.constant 0 : index
    %3 = vector.load %arg2[%c0_3, %c0_4] : memref<1x128xf32, #tpu.memory_space<vmem>>, vector<1x128xf32>
    %c0_5 = arith.constant 0 : index
    %c0_6 = arith.constant 0 : index
    %4 = vector.load %arg3[%c0_5, %c0_6] : memref<1x128xf32, #tpu.memory_space<vmem>>, vector<1x128xf32>
    %c0_7 = arith.constant 0 : index
    %c0_8 = arith.constant 0 : index
    %5 = vector.load %arg0[%c0_7, %c0_8] : memref<8x384xf32, #tpu.memory_space<vmem>>, vector<1x384xf32>
    %cst_9 = arith.constant dense<0.000000e+00> : vector<1x384xf32>
    %6 = tpu.matmul %4, %2, %cst_9 {dimension_numbers = #tpu.dot_dimension_numbers<[1], [0], [0], [1], [0, 0, 1, 1], [], []>} : vector<1x128xf32>, vector<128x384xf32>, vector<1x384xf32> -> vector<1x384xf32>
    %7 = vector.extract_strided_slice %5 {offsets = [0, 0], sizes = [1, 128], strides = [1, 1]} : vector<1x384xf32> to vector<1x128xf32>
    %8 = vector.extract_strided_slice %6 {offsets = [0, 0], sizes = [1, 128], strides = [1, 1]} : vector<1x384xf32> to vector<1x128xf32>
    %9 = arith.addf %7, %8 : vector<1x128xf32>
    %10 = arith.negf %9 : vector<1x128xf32>
    %11 = math.exp %10 : vector<1x128xf32>
    %cst_10 = arith.constant 1.000000e+00 : f32
    %12 = vector.broadcast %cst_10 : f32 to vector<1x128xf32>
    %13 = arith.addf %12, %11 : vector<1x128xf32>
    %14 = arith.divf %12, %13 : vector<1x128xf32>
    %15 = vector.extract_strided_slice %5 {offsets = [0, 128], sizes = [1, 128], strides = [1, 1]} : vector<1x384xf32> to vector<1x128xf32>
    %16 = vector.extract_strided_slice %6 {offsets = [0, 128], sizes = [1, 128], strides = [1, 1]} : vector<1x384xf32> to vector<1x128xf32>
    %17 = arith.addf %15, %16 : vector<1x128xf32>
    %18 = arith.negf %17 : vector<1x128xf32>
    %19 = math.exp %18 : vector<1x128xf32>
    %cst_11 = arith.constant 1.000000e+00 : f32
    %20 = vector.broadcast %cst_11 : f32 to vector<1x128xf32>
    %21 = arith.addf %20, %19 : vector<1x128xf32>
    %22 = arith.divf %20, %21 : vector<1x128xf32>
    %23 = vector.extract_strided_slice %5 {offsets = [0, 256], sizes = [1, 128], strides = [1, 1]} : vector<1x384xf32> to vector<1x128xf32>
    %24 = vector.extract_strided_slice %6 {offsets = [0, 256], sizes = [1, 128], strides = [1, 1]} : vector<1x384xf32> to vector<1x128xf32>
    %25 = arith.addf %24, %3 : vector<1x128xf32>
    %26 = arith.mulf %14, %25 : vector<1x128xf32>
    %27 = arith.addf %23, %26 : vector<1x128xf32>
    %28 = math.tanh %27 : vector<1x128xf32>
    %cst_12 = arith.constant 1.000000e+00 : f32
    %29 = vector.broadcast %cst_12 : f32 to vector<1x128xf32>
    %30 = arith.subf %29, %22 : vector<1x128xf32>
    %31 = arith.mulf %30, %28 : vector<1x128xf32>
    %32 = arith.mulf %22, %4 : vector<1x128xf32>
    %33 = arith.addf %31, %32 : vector<1x128xf32>
    %c0_13 = arith.constant 0 : index
    %c0_14 = arith.constant 0 : index
    %34 = vector.load %arg4[%c0_13, %c0_14] : memref<8x128xf32, #tpu.memory_space<vmem>>, vector<1x128xf32>
    tpu.vector_store %arg4[%c0_13, %c0_14], %33 {strides = array<i32>} : memref<8x128xf32, #tpu.memory_space<vmem>>, vector<1x128xf32>,
    %c1 = arith.constant 1 : index
    %c0_15 = arith.constant 0 : index
    %35 = vector.load %arg0[%c1, %c0_15] : memref<8x384xf32, #tpu.memory_space<vmem>>, vector<1x384xf32>
    %cst_16 = arith.constant dense<0.000000e+00> : vector<1x384xf32>
    %36 = tpu.matmul %33, %2, %cst_16 {dimension_numbers = #tpu.dot_dimension_numbers<[1], [0], [0], [1], [0, 0, 1, 1], [], []>} : vector<1x128xf32>, vector<128x384xf32>, vector<1x384xf32> -> vector<1x384xf32>
    %37 = vector.extract_strided_slice %35 {offsets = [0, 0], sizes = [1, 128], strides = [1, 1]} : vector<1x384xf32> to vector<1x128xf32>
    %38 = vector.extract_strided_slice %36 {offsets = [0, 0], sizes = [1, 128], strides = [1, 1]} : vector<1x384xf32> to vector<1x128xf32>
    %39 = arith.addf %37, %38 : vector<1x128xf32>
    %40 = arith.negf %39 : vector<1x128xf32>
    %41 = math.exp %40 : vector<1x128xf32>
    %cst_17 = arith.constant 1.000000e+00 : f32
    %42 = vector.broadcast %cst_17 : f32 to vector<1x128xf32>
    %43 = arith.addf %42, %41 : vector<1x128xf32>
    %44 = arith.divf %42, %43 : vector<1x128xf32>
    %45 = vector.extract_strided_slice %35 {offsets = [0, 128], sizes = [1, 128], strides = [1, 1]} : vector<1x384xf32> to vector<1x128xf32>
    %46 = vector.extract_strided_slice %36 {offsets = [0, 128], sizes = [1, 128], strides = [1, 1]} : vector<1x384xf32> to vector<1x128xf32>
    %47 = arith.addf %45, %46 : vector<1x128xf32>
    %48 = arith.negf %47 : vector<1x128xf32>
    %49 = math.exp %48 : vector<1x128xf32>
    %cst_18 = arith.constant 1.000000e+00 : f32
    %50 = vector.broadcast %cst_18 : f32 to vector<1x128xf32>
    %51 = arith.addf %50, %49 : vector<1x128xf32>
    %52 = arith.divf %50, %51 : vector<1x128xf32>
    %53 = vector.extract_strided_slice %35 {offsets = [0, 256], sizes = [1, 128], strides = [1, 1]} : vector<1x384xf32> to vector<1x128xf32>
    %54 = vector.extract_strided_slice %36 {offsets = [0, 256], sizes = [1, 128], strides = [1, 1]} : vector<1x384xf32> to vector<1x128xf32>
    %55 = arith.addf %54, %3 : vector<1x128xf32>
    %56 = arith.mulf %44, %55 : vector<1x128xf32>
    %57 = arith.addf %53, %56 : vector<1x128xf32>
    %58 = math.tanh %57 : vector<1x128xf32>
    %cst_19 = arith.constant 1.000000e+00 : f32
    %59 = vector.broadcast %cst_19 : f32 to vector<1x128xf32>
    %60 = arith.subf %59, %52 : vector<1x128xf32>
    %61 = arith.mulf %60, %58 : vector<1x128xf32>
    %62 = arith.mulf %52, %33 : vector<1x128xf32>
    %63 = arith.addf %61, %62 : vector<1x128xf32>
    %c1_20 = arith.constant 1 : index
    %c0_21 = arith.constant 0 : index
    %64 = vector.load %arg4[%c1_20, %c0_21] : memref<8x128xf32, #tpu.memory_space<vmem>>, vector<1x128xf32>
    tpu.vector_store %arg4[%c1_20, %c0_21], %63 {strides = array<i32>} : memref<8x128xf32, #tpu.memory_space<vmem>>, vector<1x128xf32>,
    %c2 = arith.constant 2 : index
    %c0_22 = arith.constant 0 : index
    %65 = vector.load %arg0[%c2, %c0_22] : memref<8x384xf32, #tpu.memory_space<vmem>>, vector<1x384xf32>
    %cst_23 = arith.constant dense<0.000000e+00> : vector<1x384xf32>
    %66 = tpu.matmul %63, %2, %cst_23 {dimension_numbers = #tpu.dot_dimension_numbers<[1], [0], [0], [1], [0, 0, 1, 1], [], []>} : vector<1x128xf32>, vector<128x384xf32>, vector<1x384xf32> -> vector<1x384xf32>
    %67 = vector.extract_strided_slice %65 {offsets = [0, 0], sizes = [1, 128], strides = [1, 1]} : vector<1x384xf32> to vector<1x128xf32>
    %68 = vector.extract_strided_slice %66 {offsets = [0, 0], sizes = [1, 128], strides = [1, 1]} : vector<1x384xf32> to vector<1x128xf32>
    %69 = arith.addf %67, %68 : vector<1x128xf32>
    %70 = arith.negf %69 : vector<1x128xf32>
    %71 = math.exp %70 : vector<1x128xf32>
    %cst_24 = arith.constant 1.000000e+00 : f32
    %72 = vector.broadcast %cst_24 : f32 to vector<1x128xf32>
    %73 = arith.addf %72, %71 : vector<1x128xf32>
    %74 = arith.divf %72, %73 : vector<1x128xf32>
    %75 = vector.extract_strided_slice %65 {offsets = [0, 128], sizes = [1, 128], strides = [1, 1]} : vector<1x384xf32> to vector<1x128xf32>
    %76 = vector.extract_strided_slice %66 {offsets = [0, 128], sizes = [1, 128], strides = [1, 1]} : vector<1x384xf32> to vector<1x128xf32>
    %77 = arith.addf %75, %76 : vector<1x128xf32>
    %78 = arith.negf %77 : vector<1x128xf32>
    %79 = math.exp %78 : vector<1x128xf32>
    %cst_25 = arith.constant 1.000000e+00 : f32
    %80 = vector.broadcast %cst_25 : f32 to vector<1x128xf32>
    %81 = arith.addf %80, %79 : vector<1x128xf32>
    %82 = arith.divf %80, %81 : vector<1x128xf32>
    %83 = vector.extract_strided_slice %65 {offsets = [0, 256], sizes = [1, 128], strides = [1, 1]} : vector<1x384xf32> to vector<1x128xf32>
    %84 = vector.extract_strided_slice %66 {offsets = [0, 256], sizes = [1, 128], strides = [1, 1]} : vector<1x384xf32> to vector<1x128xf32>
    %85 = arith.addf %84, %3 : vector<1x128xf32>
    %86 = arith.mulf %74, %85 : vector<1x128xf32>
    %87 = arith.addf %83, %86 : vector<1x128xf32>
    %88 = math.tanh %87 : vector<1x128xf32>
    %cst_26 = arith.constant 1.000000e+00 : f32
    %89 = vector.broadcast %cst_26 : f32 to vector<1x128xf32>
    %90 = arith.subf %89, %82 : vector<1x128xf32>
    %91 = arith.mulf %90, %88 : vector<1x128xf32>
    %92 = arith.mulf %82, %63 : vector<1x128xf32>
    %93 = arith.addf %91, %92 : vector<1x128xf32>
    %c2_27 = arith.constant 2 : index
    %c0_28 = arith.constant 0 : index
    %94 = vector.load %arg4[%c2_27, %c0_28] : memref<8x128xf32, #tpu.memory_space<vmem>>, vector<1x128xf32>
    tpu.vector_store %arg4[%c2_27, %c0_28], %93 {strides = array<i32>} : memref<8x128xf32, #tpu.memory_space<vmem>>, vector<1x128xf32>,
    %c3 = arith.constant 3 : index
    %c0_29 = arith.constant 0 : index
    %95 = vector.load %arg0[%c3, %c0_29] : memref<8x384xf32, #tpu.memory_space<vmem>>, vector<1x384xf32>
    %cst_30 = arith.constant dense<0.000000e+00> : vector<1x384xf32>
    %96 = tpu.matmul %93, %2, %cst_30 {dimension_numbers = #tpu.dot_dimension_numbers<[1], [0], [0], [1], [0, 0, 1, 1], [], []>} : vector<1x128xf32>, vector<128x384xf32>, vector<1x384xf32> -> vector<1x384xf32>
    %97 = vector.extract_strided_slice %95 {offsets = [0, 0], sizes = [1, 128], strides = [1, 1]} : vector<1x384xf32> to vector<1x128xf32>
    %98 = vector.extract_strided_slice %96 {offsets = [0, 0], sizes = [1, 128], strides = [1, 1]} : vector<1x384xf32> to vector<1x128xf32>
    %99 = arith.addf %97, %98 : vector<1x128xf32>
    %100 = arith.negf %99 : vector<1x128xf32>
    %101 = math.exp %100 : vector<1x128xf32>
    %cst_31 = arith.constant 1.000000e+00 : f32
    %102 = vector.broadcast %cst_31 : f32 to vector<1x128xf32>
    %103 = arith.addf %102, %101 : vector<1x128xf32>
    %104 = arith.divf %102, %103 : vector<1x128xf32>
    %105 = vector.extract_strided_slice %95 {offsets = [0, 128], sizes = [1, 128], strides = [1, 1]} : vector<1x384xf32> to vector<1x128xf32>
    %106 = vector.extract_strided_slice %96 {offsets = [0, 128], sizes = [1, 128], strides = [1, 1]} : vector<1x384xf32> to vector<1x128xf32>
    %107 = arith.addf %105, %106 : vector<1x128xf32>
    %108 = arith.negf %107 : vector<1x128xf32>
    %109 = math.exp %108 : vector<1x128xf32>
    %cst_32 = arith.constant 1.000000e+00 : f32
    %110 = vector.broadcast %cst_32 : f32 to vector<1x128xf32>
    %111 = arith.addf %110, %109 : vector<1x128xf32>
    %112 = arith.divf %110, %111 : vector<1x128xf32>
    %113 = vector.extract_strided_slice %95 {offsets = [0, 256], sizes = [1, 128], strides = [1, 1]} : vector<1x384xf32> to vector<1x128xf32>
    %114 = vector.extract_strided_slice %96 {offsets = [0, 256], sizes = [1, 128], strides = [1, 1]} : vector<1x384xf32> to vector<1x128xf32>
    %115 = arith.addf %114, %3 : vector<1x128xf32>
    %116 = arith.mulf %104, %115 : vector<1x128xf32>
    %117 = arith.addf %113, %116 : vector<1x128xf32>
    %118 = math.tanh %117 : vector<1x128xf32>
    %cst_33 = arith.constant 1.000000e+00 : f32
    %119 = vector.broadcast %cst_33 : f32 to vector<1x128xf32>
    %120 = arith.subf %119, %112 : vector<1x128xf32>
    %121 = arith.mulf %120, %118 : vector<1x128xf32>
    %122 = arith.mulf %112, %93 : vector<1x128xf32>
    %123 = arith.addf %121, %122 : vector<1x128xf32>
    %c3_34 = arith.constant 3 : index
    %c0_35 = arith.constant 0 : index
    %124 = vector.load %arg4[%c3_34, %c0_35] : memref<8x128xf32, #tpu.memory_space<vmem>>, vector<1x128xf32>
    tpu.vector_store %arg4[%c3_34, %c0_35], %123 {strides = array<i32>} : memref<8x128xf32, #tpu.memory_space<vmem>>, vector<1x128xf32>,
    %c4 = arith.constant 4 : index
    %c0_36 = arith.constant 0 : index
    %125 = vector.load %arg0[%c4, %c0_36] : memref<8x384xf32, #tpu.memory_space<vmem>>, vector<1x384xf32>
    %cst_37 = arith.constant dense<0.000000e+00> : vector<1x384xf32>
    %126 = tpu.matmul %123, %2, %cst_37 {dimension_numbers = #tpu.dot_dimension_numbers<[1], [0], [0], [1], [0, 0, 1, 1], [], []>} : vector<1x128xf32>, vector<128x384xf32>, vector<1x384xf32> -> vector<1x384xf32>
    %127 = vector.extract_strided_slice %125 {offsets = [0, 0], sizes = [1, 128], strides = [1, 1]} : vector<1x384xf32> to vector<1x128xf32>
    %128 = vector.extract_strided_slice %126 {offsets = [0, 0], sizes = [1, 128], strides = [1, 1]} : vector<1x384xf32> to vector<1x128xf32>
    %129 = arith.addf %127, %128 : vector<1x128xf32>
    %130 = arith.negf %129 : vector<1x128xf32>
    %131 = math.exp %130 : vector<1x128xf32>
    %cst_38 = arith.constant 1.000000e+00 : f32
    %132 = vector.broadcast %cst_38 : f32 to vector<1x128xf32>
    %133 = arith.addf %132, %131 : vector<1x128xf32>
    %134 = arith.divf %132, %133 : vector<1x128xf32>
    %135 = vector.extract_strided_slice %125 {offsets = [0, 128], sizes = [1, 128], strides = [1, 1]} : vector<1x384xf32> to vector<1x128xf32>
    %136 = vector.extract_strided_slice %126 {offsets = [0, 128], sizes = [1, 128], strides = [1, 1]} : vector<1x384xf32> to vector<1x128xf32>
    %137 = arith.addf %135, %136 : vector<1x128xf32>
    %138 = arith.negf %137 : vector<1x128xf32>
    %139 = math.exp %138 : vector<1x128xf32>
    %cst_39 = arith.constant 1.000000e+00 : f32
    %140 = vector.broadcast %cst_39 : f32 to vector<1x128xf32>
    %141 = arith.addf %140, %139 : vector<1x128xf32>
    %142 = arith.divf %140, %141 : vector<1x128xf32>
    %143 = vector.extract_strided_slice %125 {offsets = [0, 256], sizes = [1, 128], strides = [1, 1]} : vector<1x384xf32> to vector<1x128xf32>
    %144 = vector.extract_strided_slice %126 {offsets = [0, 256], sizes = [1, 128], strides = [1, 1]} : vector<1x384xf32> to vector<1x128xf32>
    %145 = arith.addf %144, %3 : vector<1x128xf32>
    %146 = arith.mulf %134, %145 : vector<1x128xf32>
    %147 = arith.addf %143, %146 : vector<1x128xf32>
    %148 = math.tanh %147 : vector<1x128xf32>
    %cst_40 = arith.constant 1.000000e+00 : f32
    %149 = vector.broadcast %cst_40 : f32 to vector<1x128xf32>
    %150 = arith.subf %149, %142 : vector<1x128xf32>
    %151 = arith.mulf %150, %148 : vector<1x128xf32>
    %152 = arith.mulf %142, %123 : vector<1x128xf32>
    %153 = arith.addf %151, %152 : vector<1x128xf32>
    %c4_41 = arith.constant 4 : index
    %c0_42 = arith.constant 0 : index
    %154 = vector.load %arg4[%c4_41, %c0_42] : memref<8x128xf32, #tpu.memory_space<vmem>>, vector<1x128xf32>
    tpu.vector_store %arg4[%c4_41, %c0_42], %153 {strides = array<i32>} : memref<8x128xf32, #tpu.memory_space<vmem>>, vector<1x128xf32>,
    %c5 = arith.constant 5 : index
    %c0_43 = arith.constant 0 : index
    %155 = vector.load %arg0[%c5, %c0_43] : memref<8x384xf32, #tpu.memory_space<vmem>>, vector<1x384xf32>
    %cst_44 = arith.constant dense<0.000000e+00> : vector<1x384xf32>
    %156 = tpu.matmul %153, %2, %cst_44 {dimension_numbers = #tpu.dot_dimension_numbers<[1], [0], [0], [1], [0, 0, 1, 1], [], []>} : vector<1x128xf32>, vector<128x384xf32>, vector<1x384xf32> -> vector<1x384xf32>
    %157 = vector.extract_strided_slice %155 {offsets = [0, 0], sizes = [1, 128], strides = [1, 1]} : vector<1x384xf32> to vector<1x128xf32>
    %158 = vector.extract_strided_slice %156 {offsets = [0, 0], sizes = [1, 128], strides = [1, 1]} : vector<1x384xf32> to vector<1x128xf32>
    %159 = arith.addf %157, %158 : vector<1x128xf32>
    %160 = arith.negf %159 : vector<1x128xf32>
    %161 = math.exp %160 : vector<1x128xf32>
    %cst_45 = arith.constant 1.000000e+00 : f32
    %162 = vector.broadcast %cst_45 : f32 to vector<1x128xf32>
    %163 = arith.addf %162, %161 : vector<1x128xf32>
    %164 = arith.divf %162, %163 : vector<1x128xf32>
    %165 = vector.extract_strided_slice %155 {offsets = [0, 128], sizes = [1, 128], strides = [1, 1]} : vector<1x384xf32> to vector<1x128xf32>
    %166 = vector.extract_strided_slice %156 {offsets = [0, 128], sizes = [1, 128], strides = [1, 1]} : vector<1x384xf32> to vector<1x128xf32>
    %167 = arith.addf %165, %166 : vector<1x128xf32>
    %168 = arith.negf %167 : vector<1x128xf32>
    %169 = math.exp %168 : vector<1x128xf32>
    %cst_46 = arith.constant 1.000000e+00 : f32
    %170 = vector.broadcast %cst_46 : f32 to vector<1x128xf32>
    %171 = arith.addf %170, %169 : vector<1x128xf32>
    %172 = arith.divf %170, %171 : vector<1x128xf32>
    %173 = vector.extract_strided_slice %155 {offsets = [0, 256], sizes = [1, 128], strides = [1, 1]} : vector<1x384xf32> to vector<1x128xf32>
    %174 = vector.extract_strided_slice %156 {offsets = [0, 256], sizes = [1, 128], strides = [1, 1]} : vector<1x384xf32> to vector<1x128xf32>
    %175 = arith.addf %174, %3 : vector<1x128xf32>
    %176 = arith.mulf %164, %175 : vector<1x128xf32>
    %177 = arith.addf %173, %176 : vector<1x128xf32>
    %178 = math.tanh %177 : vector<1x128xf32>
    %cst_47 = arith.constant 1.000000e+00 : f32
    %179 = vector.broadcast %cst_47 : f32 to vector<1x128xf32>
    %180 = arith.subf %179, %172 : vector<1x128xf32>
    %181 = arith.mulf %180, %178 : vector<1x128xf32>
    %182 = arith.mulf %172, %153 : vector<1x128xf32>
    %183 = arith.addf %181, %182 : vector<1x128xf32>
    %c5_48 = arith.constant 5 : index
    %c0_49 = arith.constant 0 : index
    %184 = vector.load %arg4[%c5_48, %c0_49] : memref<8x128xf32, #tpu.memory_space<vmem>>, vector<1x128xf32>
    tpu.vector_store %arg4[%c5_48, %c0_49], %183 {strides = array<i32>} : memref<8x128xf32, #tpu.memory_space<vmem>>, vector<1x128xf32>,
    %c6 = arith.constant 6 : index
    %c0_50 = arith.constant 0 : index
    %185 = vector.load %arg0[%c6, %c0_50] : memref<8x384xf32, #tpu.memory_space<vmem>>, vector<1x384xf32>
    %cst_51 = arith.constant dense<0.000000e+00> : vector<1x384xf32>
    %186 = tpu.matmul %183, %2, %cst_51 {dimension_numbers = #tpu.dot_dimension_numbers<[1], [0], [0], [1], [0, 0, 1, 1], [], []>} : vector<1x128xf32>, vector<128x384xf32>, vector<1x384xf32> -> vector<1x384xf32>
    %187 = vector.extract_strided_slice %185 {offsets = [0, 0], sizes = [1, 128], strides = [1, 1]} : vector<1x384xf32> to vector<1x128xf32>
    %188 = vector.extract_strided_slice %186 {offsets = [0, 0], sizes = [1, 128], strides = [1, 1]} : vector<1x384xf32> to vector<1x128xf32>
    %189 = arith.addf %187, %188 : vector<1x128xf32>
    %190 = arith.negf %189 : vector<1x128xf32>
    %191 = math.exp %190 : vector<1x128xf32>
    %cst_52 = arith.constant 1.000000e+00 : f32
    %192 = vector.broadcast %cst_52 : f32 to vector<1x128xf32>
    %193 = arith.addf %192, %191 : vector<1x128xf32>
    %194 = arith.divf %192, %193 : vector<1x128xf32>
    %195 = vector.extract_strided_slice %185 {offsets = [0, 128], sizes = [1, 128], strides = [1, 1]} : vector<1x384xf32> to vector<1x128xf32>
    %196 = vector.extract_strided_slice %186 {offsets = [0, 128], sizes = [1, 128], strides = [1, 1]} : vector<1x384xf32> to vector<1x128xf32>
    %197 = arith.addf %195, %196 : vector<1x128xf32>
    %198 = arith.negf %197 : vector<1x128xf32>
    %199 = math.exp %198 : vector<1x128xf32>
    %cst_53 = arith.constant 1.000000e+00 : f32
    %200 = vector.broadcast %cst_53 : f32 to vector<1x128xf32>
    %201 = arith.addf %200, %199 : vector<1x128xf32>
    %202 = arith.divf %200, %201 : vector<1x128xf32>
    %203 = vector.extract_strided_slice %185 {offsets = [0, 256], sizes = [1, 128], strides = [1, 1]} : vector<1x384xf32> to vector<1x128xf32>
    %204 = vector.extract_strided_slice %186 {offsets = [0, 256], sizes = [1, 128], strides = [1, 1]} : vector<1x384xf32> to vector<1x128xf32>
    %205 = arith.addf %204, %3 : vector<1x128xf32>
    %206 = arith.mulf %194, %205 : vector<1x128xf32>
    %207 = arith.addf %203, %206 : vector<1x128xf32>
    %208 = math.tanh %207 : vector<1x128xf32>
    %cst_54 = arith.constant 1.000000e+00 : f32
    %209 = vector.broadcast %cst_54 : f32 to vector<1x128xf32>
    %210 = arith.subf %209, %202 : vector<1x128xf32>
    %211 = arith.mulf %210, %208 : vector<1x128xf32>
    %212 = arith.mulf %202, %183 : vector<1x128xf32>
    %213 = arith.addf %211, %212 : vector<1x128xf32>
    %c6_55 = arith.constant 6 : index
    %c0_56 = arith.constant 0 : index
    %214 = vector.load %arg4[%c6_55, %c0_56] : memref<8x128xf32, #tpu.memory_space<vmem>>, vector<1x128xf32>
    tpu.vector_store %arg4[%c6_55, %c0_56], %213 {strides = array<i32>} : memref<8x128xf32, #tpu.memory_space<vmem>>, vector<1x128xf32>,
    %c7 = arith.constant 7 : index
    %c0_57 = arith.constant 0 : index
    %215 = vector.load %arg0[%c7, %c0_57] : memref<8x384xf32, #tpu.memory_space<vmem>>, vector<1x384xf32>
    %cst_58 = arith.constant dense<0.000000e+00> : vector<1x384xf32>
    %216 = tpu.matmul %213, %2, %cst_58 {dimension_numbers = #tpu.dot_dimension_numbers<[1], [0], [0], [1], [0, 0, 1, 1], [], []>} : vector<1x128xf32>, vector<128x384xf32>, vector<1x384xf32> -> vector<1x384xf32>
    %217 = vector.extract_strided_slice %215 {offsets = [0, 0], sizes = [1, 128], strides = [1, 1]} : vector<1x384xf32> to vector<1x128xf32>
    %218 = vector.extract_strided_slice %216 {offsets = [0, 0], sizes = [1, 128], strides = [1, 1]} : vector<1x384xf32> to vector<1x128xf32>
    %219 = arith.addf %217, %218 : vector<1x128xf32>
    %220 = arith.negf %219 : vector<1x128xf32>
    %221 = math.exp %220 : vector<1x128xf32>
    %cst_59 = arith.constant 1.000000e+00 : f32
    %222 = vector.broadcast %cst_59 : f32 to vector<1x128xf32>
    %223 = arith.addf %222, %221 : vector<1x128xf32>
    %224 = arith.divf %222, %223 : vector<1x128xf32>
    %225 = vector.extract_strided_slice %215 {offsets = [0, 128], sizes = [1, 128], strides = [1, 1]} : vector<1x384xf32> to vector<1x128xf32>
    %226 = vector.extract_strided_slice %216 {offsets = [0, 128], sizes = [1, 128], strides = [1, 1]} : vector<1x384xf32> to vector<1x128xf32>
    %227 = arith.addf %225, %226 : vector<1x128xf32>
    %228 = arith.negf %227 : vector<1x128xf32>
    %229 = math.exp %228 : vector<1x128xf32>
    %cst_60 = arith.constant 1.000000e+00 : f32
    %230 = vector.broadcast %cst_60 : f32 to vector<1x128xf32>
    %231 = arith.addf %230, %229 : vector<1x128xf32>
    %232 = arith.divf %230, %231 : vector<1x128xf32>
    %233 = vector.extract_strided_slice %215 {offsets = [0, 256], sizes = [1, 128], strides = [1, 1]} : vector<1x384xf32> to vector<1x128xf32>
    %234 = vector.extract_strided_slice %216 {offsets = [0, 256], sizes = [1, 128], strides = [1, 1]} : vector<1x384xf32> to vector<1x128xf32>
    %235 = arith.addf %234, %3 : vector<1x128xf32>
    %236 = arith.mulf %224, %235 : vector<1x128xf32>
    %237 = arith.addf %233, %236 : vector<1x128xf32>
    %238 = math.tanh %237 : vector<1x128xf32>
    %cst_61 = arith.constant 1.000000e+00 : f32
    %239 = vector.broadcast %cst_61 : f32 to vector<1x128xf32>
    %240 = arith.subf %239, %232 : vector<1x128xf32>
    %241 = arith.mulf %240, %238 : vector<1x128xf32>
    %242 = arith.mulf %232, %213 : vector<1x128xf32>
    %243 = arith.addf %241, %242 : vector<1x128xf32>
    %c7_62 = arith.constant 7 : index
    %c0_63 = arith.constant 0 : index
    %244 = vector.load %arg4[%c7_62, %c0_63] : memref<8x128xf32, #tpu.memory_space<vmem>>, vector<1x128xf32>
    tpu.vector_store %arg4[%c7_62, %c0_63], %243 {strides = array<i32>} : memref<8x128xf32, #tpu.memory_space<vmem>>, vector<1x128xf32>,
    return
  }
}

</mosaic_0001>

<bundles_post_ra>
// kernel: encoder_rnn_forward.1
= control target key start
LH: loop header
LB: loop body
LE: loop exit
PB: predicated region body
PF: predicated region fallthrough
CT: control target
= control target key end

     0   :  { %9 = vsyncpa [#allocation3], 0  ;;  %s1198_s18 = smov [#allocation2]   ;;  %s1199_s20 = smov 384   ;;  %s1823_s0 = inlined_call_operand.vmem [shape: f32[8,384], index: 0, kind: input, shape index: {}]   ;;  %s1824_s1 = inlined_call_operand.hbm [shape: f32[128,384], index: 1, kind: input, shape index: {}]   ;;  %s1825_s2 = inlined_call_operand.vmem [shape: f32[1,128], index: 2, kind: input, shape index: {}]   ;;  %s1826_s3 = inlined_call_operand.vmem [shape: f32[1,128], index: 3, kind: input, shape index: {}]   ;;  %s1827_s4 = inlined_call_operand.vmem [shape: f32[8,128], index: 4, kind: output, shape index: {}]  }
   0x1   :  { %s16_s17 = sshll.u32 %s1824_s1, 4  ;;  %s18_s19 = sshll.u32 %s1198_s18, 4  ;;  %s17_s17 = int_to_ptr.hbm [resolvable:$true] %s16_s17  ;;  %s19_s19 = int_to_ptr.vmem [resolvable:$true] %s18_s19 }
   0x2   :  { %s1200_s21 = smov 24  }
   0x3   :  { %24 = dma.hbm_to_vmem [thread:$0]  %s17_s17, 6144, %s19_s19, [#allocation3], %s1199_s20, %s1199_s20, %s1200_s21  }
   0x4   :  { %1196 = dma.done.wait [#allocation3], 6144  }
   0x5   :  { %1197 = vsyncadd [#allocation3], 4294961152  ;;  %v1230_v0 = vld [vmem:[#allocation2 + $0x168] sm:$0xff]  ;;  %v1232_v1 = vld [vmem:[#allocation2 + $0x170] sm:$0xff]  ;;  %v1201_v58 = vmov 0.0  }
   0x6   :  { %v1234_v2 = vld [vmem:[#allocation2 + $0x150] sm:$0xff]  ;;  %85 = vmatpush.msra.mxu0 %v1230_v0  ;;  %105 = vmatpush.msra.mxu1 %v1232_v1  ;;  %v1238_v3 = vld [vmem:[#allocation2 + $0x158] sm:$0xff]  ;;  %v1242_v5 = vld [vmem:[#allocation2 + $0x140] sm:$0xff]  ;;  %33 = vst [vmem:[%s1827_s4] sm:$0xff] %v1201_v58 }
   0x7   :  { %v1240_v4 = vld [vmem:[#allocation2 + $0x138] sm:$0xff]  ;;  %201 = vmatpush.msra.mxu3 %v1230_v0  ;;  %v1247_v6 = vld [vmem:[#allocation2 + $0x120] sm:$0xff]  ;;  %v1249_v7 = vld [vmem:[#allocation2 + $0x128] sm:$0xff] }
   0x8   :  { %86 = vmatpush.msra.mxu0 %v1234_v2  ;;  %106 = vmatpush.msra.mxu1 %v1238_v3  ;;  %v1254_v8 = vld [vmem:[#allocation2 + $0x108] sm:$0xff]  ;;  %v1256_v9 = vld [vmem:[#allocation2 + $0x110] sm:$0xff]  ;;  %v1263_v11 = vld [vmem:[#allocation2 + $0xf8] sm:$0xff] }
   0x9   :  { %202 = vmatpush.msra.mxu3 %v1234_v2  ;;  %v1261_v10 = vld [vmem:[#allocation2 + $0xf0] sm:$0xff]  ;;  %v1265_v12 = vld [vmem:[#allocation2 + $0x178] sm:$0xff]  ;;  %v1270_v13 = vld [vmem:[#allocation2 + $0x160] sm:$0xff] }
   0xa   :  { %87 = vmatpush.msra.mxu0 %v1240_v4  ;;  %107 = vmatpush.msra.mxu1 %v1242_v5  ;;  %v1272_v14 = vld [vmem:[#allocation2 + $0xd8] sm:$0xff]  ;;  %v1274_v15 = vld [vmem:[#allocation2 + $0xe0] sm:$0xff]  ;;  %v1280_v16 = vld [vmem:[#allocation2 + $0x148] sm:$0xff] }
   0xb   :  { %203 = vmatpush.msra.mxu3 %v1240_v4  ;;  %125 = vmatpush.msra.mxu2 %v1265_v12  ;;  %v1282_v17 = vld [vmem:[#allocation2 + $0xc0] sm:$0xff]  ;;  %v1284_v18 = vld [vmem:[#allocation2 + $0xc8] sm:$0xff]  ;;  %v1290_v19 = vld [vmem:[#allocation2 + $0x130] sm:$0xff] }
   0xc   :  { %88 = vmatpush.msra.mxu0 %v1247_v6  ;;  %108 = vmatpush.msra.mxu1 %v1249_v7  ;;  %v1292_v20 = vld [vmem:[#allocation2 + $0xa8] sm:$0xff]  ;;  %v1294_v21 = vld [vmem:[#allocation2 + $0xb0] sm:$0xff]  ;;  %v1300_v22 = vld [vmem:[#allocation2 + $0x118] sm:$0xff] }
   0xd   :  { %204 = vmatpush.msra.mxu3 %v1247_v6  ;;  %126 = vmatpush.msra.mxu2 %v1270_v13  ;;  %v1302_v23 = vld [vmem:[#allocation2 + $0x90] sm:$0xff]  ;;  %v1304_v24 = vld [vmem:[#allocation2 + $0x98] sm:$0xff]  ;;  %v1310_v25 = vld [vmem:[#allocation2 + $0x100] sm:$0xff] }
   0xe   :  { %89 = vmatpush.msra.mxu0 %v1254_v8  ;;  %109 = vmatpush.msra.mxu1 %v1256_v9  ;;  %v1312_v26 = vld [vmem:[#allocation2 + $0x78] sm:$0xff]  ;;  %v1314_v27 = vld [vmem:[#allocation2 + $0x80] sm:$0xff]  ;;  %v1320_v28 = vld [vmem:[#allocation2 + $0xe8] sm:$0xff] }
   0xf   :  { %205 = vmatpush.msra.mxu3 %v1254_v8  ;;  %127 = vmatpush.msra.mxu2 %v1280_v16  ;;  %v1322_v29 = vld [vmem:[#allocation2 + $0x60] sm:$0xff]  ;;  %v1324_v30 = vld [vmem:[#allocation2 + $0x68] sm:$0xff]  ;;  %v1330_v31 = vld [vmem:[#allocation2 + $0xd0] sm:$0xff] }
  0x10   :  { %90 = vmatpush.msra.mxu0 %v1261_v10  ;;  %110 = vmatpush.msra.mxu1 %v1263_v11  ;;  %v1332_v32 = vld [vmem:[#allocation2 + $0x48] sm:$0xff]  ;;  %v1334_v33 = vld [vmem:[#allocation2 + $0x50] sm:$0xff]  ;;  %v1340_v34 = vld [vmem:[#allocation2 + $0xb8] sm:$0xff] }
  0x11   :  { %206 = vmatpush.msra.mxu3 %v1261_v10  ;;  %128 = vmatpush.msra.mxu2 %v1290_v19  ;;  %v1342_v35 = vld [vmem:[#allocation2 + $0x30] sm:$0xff]  ;;  %v1344_v36 = vld [vmem:[#allocation2 + $0x38] sm:$0xff]  ;;  %v1350_v37 = vld [vmem:[#allocation2 + $0xa0] sm:$0xff] }
  0x12   :  { %91 = vmatpush.msra.mxu0 %v1272_v14  ;;  %111 = vmatpush.msra.mxu1 %v1274_v15  ;;  %1846 = vst [vmem:[#allocation5_spill] sm:$0xff] %v1342_v35  ;;  %v1352_v38 = vld [vmem:[#allocation2 + $0x18] sm:$0xff]  ;;  %v1354_v39 = vld [vmem:[#allocation2 + $0x20] sm:$0xff]  ;;  %v1360_v40 = vld [vmem:[#allocation2 + $0x88] sm:$0xff] }
  0x13   :  { %207 = vmatpush.msra.mxu3 %v1272_v14  ;;  %129 = vmatpush.msra.mxu2 %v1300_v22  ;;  %1847 = vst [vmem:[#allocation6_spill] sm:$0xff] %v1344_v36  ;;  %v1362_v41 = vld [vmem:[#allocation2] sm:$0xff]  ;;  %v1364_v42 = vld [vmem:[#allocation2 + $0x8] sm:$0xff]  ;;  %v1376_v44 = vld [vmem:[#allocation2 + $0x70] sm:$0xff] }
  0x14   :  { %92 = vmatpush.msra.mxu0 %v1282_v17  ;;  %112 = vmatpush.msra.mxu1 %v1284_v18  ;;  %1848 = vst [vmem:[#allocation7_spill] sm:$0xff] %v1352_v38  ;;  %v1373_v43 = vld [vmem:[%s1826_s3] sm:$0x1]  ;;  %v1383_v45 = vld [vmem:[#allocation2 + $0x58] sm:$0xff]  ;;  %v1393_v47 = vld [vmem:[#allocation2 + $0x28] sm:$0xff] }
  0x15   :  { %208 = vmatpush.msra.mxu3 %v1282_v17  ;;  %130 = vmatpush.msra.mxu2 %v1310_v25  ;;  %1849 = vst [vmem:[#allocation8_spill] sm:$0xff] %v1354_v39  ;;  %v1387_v46 = vld [vmem:[#allocation2 + $0x40] sm:$0xff]  ;;  %v1399_v48 = vld [vmem:[#allocation2 + $0x10] sm:$0xff] }
  0x16   :  { %93 = vmatpush.msra.mxu0 %v1292_v20  ;;  %113 = vmatpush.msra.mxu1 %v1294_v21  ;;  %1850 = vst [vmem:[#allocation9_spill] sm:$0xff] %v1362_v41  ;;  %v84_v49 = vld [vmem:[%s1823_s0] ss:$8 sm:$0x7] }
  0x17   :  { %209 = vmatpush.msra.mxu3 %v1292_v20  ;;  %131 = vmatpush.msra.mxu2 %v1320_v28  ;;  %1851 = vst [vmem:[#allocation10_spill] sm:$0xff] %v1364_v42  ;;  %v166_v50 = vrot.slane %v84_v49, 1 }
  0x18   :  { %94 = vmatpush.msra.mxu0 %v1302_v23  ;;  %114 = vmatpush.msra.mxu1 %v1304_v24  ;;  %1852 = vst [vmem:[#allocation11_spill] sm:$0xff] %v1387_v46 }
  0x19   :  { %210 = vmatpush.msra.mxu3 %v1302_v23  ;;  %132 = vmatpush.msra.mxu2 %v1330_v31  ;;  %1853 = vst [vmem:[#allocation12_spill] sm:$0xff] %v1393_v47 }
  0x1a   :  { %95 = vmatpush.msra.mxu0 %v1312_v26  ;;  %115 = vmatpush.msra.mxu1 %v1314_v27  ;;  %1854 = vst [vmem:[#allocation13_spill] sm:$0xff] %v1399_v48 }
  0x1b   :  { %211 = vmatpush.msra.mxu3 %v1312_v26  ;;  %133 = vmatpush.msra.mxu2 %v1340_v34 }
  0x1c   :  { %96 = vmatpush.msra.mxu0 %v1322_v29  ;;  %116 = vmatpush.msra.mxu1 %v1324_v30 }
  0x1d   :  { %212 = vmatpush.msra.mxu3 %v1322_v29  ;;  %134 = vmatpush.msra.mxu2 %v1350_v37 }
  0x1e   :  { %97 = vmatpush.msra.mxu0 %v1332_v32  ;;  %117 = vmatpush.msra.mxu1 %v1334_v33 }
  0x1f   :  { %213 = vmatpush.msra.mxu3 %v1332_v32  ;;  %135 = vmatpush.msra.mxu2 %v1360_v40 }
  0x20   :  { %98 = vmatpush.msra.mxu0 %v1342_v35  ;;  %118 = vmatpush.msra.mxu1 %v1344_v36 }
  0x21   :  { %214 = vmatpush.msra.mxu3 %v1342_v35  ;;  %136 = vmatpush.msra.mxu2 %v1376_v44 }
  0x22   :  { %99 = vmatpush.msra.mxu0 %v1352_v38  ;;  %119 = vmatpush.msra.mxu1 %v1354_v39 }
  0x23   :  { %215 = vmatpush.msra.mxu3 %v1352_v38  ;;  %137 = vmatpush.msra.mxu2 %v1383_v45 }
  0x24   :  { %100 = vmatpush.msra.mxu0 %v1362_v41  ;;  %120 = vmatpush.msra.mxu1 %v1364_v42 }
  0x25   :  { %101 = vmatmul.f32.vlgmr.msra.gmra.mxu0 %v1373_v43  ;;  %121 = vmatmul.f32.vlgmr.msra.gmra.mxu1 %v1373_v43 }
  0x26   :  { %221 = vmatpush.msrb.mxu0 %v1232_v1  ;;  %241 = vmatpush.msrb.mxu1 %v1265_v12 }
  0x27   :  { %216 = vmatpush.msra.mxu3 %v1362_v41  ;;  %138 = vmatpush.msra.mxu2 %v1387_v46 }
  0x28   :  { %222 = vmatpush.msrb.mxu0 %v1238_v3  ;;  %242 = vmatpush.msrb.mxu1 %v1270_v13 }
  0x29   :  { %337 = vmatpush.msrb.mxu3 %v1232_v1  ;;  %139 = vmatpush.msra.mxu2 %v1393_v47 }
  0x2a   :  { %223 = vmatpush.msrb.mxu0 %v1242_v5  ;;  %243 = vmatpush.msrb.mxu1 %v1280_v16 }
  0x2b   :  { %338 = vmatpush.msrb.mxu3 %v1238_v3  ;;  %140 = vmatpush.msra.mxu2 %v1399_v48 }
  0x2c   :  { %224 = vmatpush.msrb.mxu0 %v1249_v7  ;;  %244 = vmatpush.msrb.mxu1 %v1290_v19 }
  0x2d   :  { %339 = vmatpush.msrb.mxu3 %v1242_v5  ;;  %141 = vmatmul.f32.vlgmr.msra.gmra.mxu2 %v1373_v43 }
  0x2e   :  { %225 = vmatpush.msrb.mxu0 %v1256_v9  ;;  %245 = vmatpush.msrb.mxu1 %v1300_v22 }
  0x2f   :  { %317 = vmatpush.msrb.mxu2 %v1230_v0  ;;  %340 = vmatpush.msrb.mxu3 %v1249_v7 }
  0x30   :  { %226 = vmatpush.msrb.mxu0 %v1263_v11  ;;  %246 = vmatpush.msrb.mxu1 %v1310_v25 }
  0x31   :  { %318 = vmatpush.msrb.mxu2 %v1234_v2  ;;  %341 = vmatpush.msrb.mxu3 %v1256_v9 }
  0x32   :  { %227 = vmatpush.msrb.mxu0 %v1274_v15  ;;  %247 = vmatpush.msrb.mxu1 %v1320_v28 }
  0x33   :  { %319 = vmatpush.msrb.mxu2 %v1240_v4  ;;  %342 = vmatpush.msrb.mxu3 %v1263_v11 }
  0x34   :  { %228 = vmatpush.msrb.mxu0 %v1284_v18  ;;  %248 = vmatpush.msrb.mxu1 %v1330_v31 }
  0x35   :  { %320 = vmatpush.msrb.mxu2 %v1247_v6  ;;  %343 = vmatpush.msrb.mxu3 %v1274_v15 }
  0x36   :  { %229 = vmatpush.msrb.mxu0 %v1294_v21  ;;  %249 = vmatpush.msrb.mxu1 %v1340_v34 }
  0x37   :  { %321 = vmatpush.msrb.mxu2 %v1254_v8  ;;  %344 = vmatpush.msrb.mxu3 %v1284_v18 }
  0x38   :  { %230 = vmatpush.msrb.mxu0 %v1304_v24  ;;  %250 = vmatpush.msrb.mxu1 %v1350_v37 }
  0x39   :  { %322 = vmatpush.msrb.mxu2 %v1261_v10  ;;  %345 = vmatpush.msrb.mxu3 %v1294_v21 }
  0x3a   :  { %231 = vmatpush.msrb.mxu0 %v1314_v27  ;;  %251 = vmatpush.msrb.mxu1 %v1360_v40 }
  0x3b   :  { %323 = vmatpush.msrb.mxu2 %v1272_v14  ;;  %346 = vmatpush.msrb.mxu3 %v1304_v24 }
  0x3c   :  { %232 = vmatpush.msrb.mxu0 %v1324_v30  ;;  %252 = vmatpush.msrb.mxu1 %v1376_v44 }
  0x3d   :  { %324 = vmatpush.msrb.mxu2 %v1282_v17  ;;  %347 = vmatpush.msrb.mxu3 %v1314_v27 }
  0x3e   :  { %233 = vmatpush.msrb.mxu0 %v1334_v33  ;;  %253 = vmatpush.msrb.mxu1 %v1383_v45 }
  0x3f   :  { %325 = vmatpush.msrb.mxu2 %v1292_v20  ;;  %348 = vmatpush.msrb.mxu3 %v1324_v30 }
  0x40   :  { %234 = vmatpush.msrb.mxu0 %v1344_v36  ;;  %254 = vmatpush.msrb.mxu1 %v1387_v46 }
  0x41   :  { %326 = vmatpush.msrb.mxu2 %v1302_v23  ;;  %349 = vmatpush.msrb.mxu3 %v1334_v33 }
  0x42   :  { %235 = vmatpush.msrb.mxu0 %v1354_v39  ;;  %255 = vmatpush.msrb.mxu1 %v1393_v47 }
  0x43   :  { %327 = vmatpush.msrb.mxu2 %v1312_v26  ;;  %350 = vmatpush.msrb.mxu3 %v1344_v36 }
  0x44   :  { %236 = vmatpush.msrb.mxu0 %v1364_v42  ;;  %256 = vmatpush.msrb.mxu1 %v1399_v48 }
  0x45   :  { %328 = vmatpush.msrb.mxu2 %v1322_v29  ;;  %351 = vmatpush.msrb.mxu3 %v1354_v39 }
  0x46   :  { %357 = vmatpush.msra.mxu0 %v1265_v12  ;;  %433 = vmatpush.msra.mxu1 %v1230_v0 }
  0x47   :  { %329 = vmatpush.msrb.mxu2 %v1332_v32  ;;  %352 = vmatpush.msrb.mxu3 %v1364_v42 }
  0x48   :  { %358 = vmatpush.msra.mxu0 %v1270_v13  ;;  %434 = vmatpush.msra.mxu1 %v1234_v2 }
  0x49   :  { %330 = vmatpush.msrb.mxu2 %v1342_v35 }
  0x4a   :  { %359 = vmatpush.msra.mxu0 %v1280_v16  ;;  %435 = vmatpush.msra.mxu1 %v1240_v4 }
  0x4b   :  { %331 = vmatpush.msrb.mxu2 %v1352_v38 }
  0x4c   :  { %360 = vmatpush.msra.mxu0 %v1290_v19  ;;  %436 = vmatpush.msra.mxu1 %v1247_v6 }
  0x4d   :  { %332 = vmatpush.msrb.mxu2 %v1362_v41 }
  0x4e   :  { %361 = vmatpush.msra.mxu0 %v1300_v22  ;;  %437 = vmatpush.msra.mxu1 %v1254_v8 }
  0x4f   :  { %453 = vmatpush.msra.mxu2 %v1232_v1 }
  0x50   :  { %362 = vmatpush.msra.mxu0 %v1310_v25  ;;  %438 = vmatpush.msra.mxu1 %v1261_v10 }
  0x51   :  { %454 = vmatpush.msra.mxu2 %v1238_v3 }
  0x52   :  { %363 = vmatpush.msra.mxu0 %v1320_v28  ;;  %439 = vmatpush.msra.mxu1 %v1272_v14 }
  0x53   :  { %455 = vmatpush.msra.mxu2 %v1242_v5 }
  0x54   :  { %364 = vmatpush.msra.mxu0 %v1330_v31  ;;  %440 = vmatpush.msra.mxu1 %v1282_v17 }
  0x55   :  { %456 = vmatpush.msra.mxu2 %v1249_v7 }
  0x56   :  { %365 = vmatpush.msra.mxu0 %v1340_v34  ;;  %441 = vmatpush.msra.mxu1 %v1292_v20 }
  0x57   :  { %457 = vmatpush.msra.mxu2 %v1256_v9 }
  0x58   :  { %366 = vmatpush.msra.mxu0 %v1350_v37  ;;  %442 = vmatpush.msra.mxu1 %v1302_v23 }
  0x59   :  { %458 = vmatpush.msra.mxu2 %v1263_v11 }
  0x5a   :  { %367 = vmatpush.msra.mxu0 %v1360_v40  ;;  %443 = vmatpush.msra.mxu1 %v1312_v26 }
  0x5b   :  { %459 = vmatpush.msra.mxu2 %v1274_v15 }
  0x5c   :  { %368 = vmatpush.msra.mxu0 %v1376_v44  ;;  %444 = vmatpush.msra.mxu1 %v1322_v29 }
  0x5d   :  { %460 = vmatpush.msra.mxu2 %v1284_v18 }
  0x5e   :  { %369 = vmatpush.msra.mxu0 %v1383_v45  ;;  %445 = vmatpush.msra.mxu1 %v1332_v32 }
  0x5f   :  { %461 = vmatpush.msra.mxu2 %v1294_v21 }
  0x60   :  { %370 = vmatpush.msra.mxu0 %v1387_v46  ;;  %446 = vmatpush.msra.mxu1 %v1342_v35 }
  0x61   :  { %462 = vmatpush.msra.mxu2 %v1304_v24 }
  0x62   :  { %371 = vmatpush.msra.mxu0 %v1393_v47  ;;  %447 = vmatpush.msra.mxu1 %v1352_v38 }
  0x63   :  { %463 = vmatpush.msra.mxu2 %v1314_v27 }
  0x64   :  { %372 = vmatpush.msra.mxu0 %v1399_v48  ;;  %448 = vmatpush.msra.mxu1 %v1362_v41 }
  0x65   :  { %464 = vmatpush.msra.mxu2 %v1324_v30 }
  0x67   :  { %465 = vmatpush.msra.mxu2 %v1334_v33 }
  0x69   :  { %466 = vmatpush.msra.mxu2 %v1344_v36 }
  0x6b   :  { %467 = vmatpush.msra.mxu2 %v1354_v39  ;;  %v190_v39 = vrot.slane %v84_v49, 2 }
  0x6d   :  { %468 = vmatpush.msra.mxu2 %v1364_v42 }
  0xa2   :  { %v102_v51 = vpop.f32.mrf.mxu0  ;;  %v122_v52 = vpop.f32.mrf.mxu1 }
  0xa3   :  { %v145_v53 = vadd.f32 %v102_v51, %v84_v49  ;;  %v168_v54 = vadd.f32 %v166_v50, %v122_v52 }
  0xa5   :  { %v1016_v55 = vmul.f32 -1.442695, %v145_v53  ;;  %v1017_v56 = vmul.f32 -1.442695, %v168_v54  ;;  %v1519_v53 = vld [vmem:[%s1825_s2] sm:$0x1] }
  0xa7   :  { %1043 = vpow2.f32 %v1016_v55 }
  0xa8   :  { %1045 = vpow2.f32 %v1017_v56 }
  0xad   :  { %v1044_v57 = vpop.eup %1043 }
  0xae   :  { %v1046_v59 = vpop.eup %1045  ;;  %v149_v60 = vadd.f32 1.0, %v1044_v57 }
  0xaf   :  { %v172_v61 = vadd.f32 1.0, %v1046_v59 }
  0xb0   :  { %1047 = vrcp.f32 %v149_v60  ;;  %v142_v54 = vpop.f32.mrf.mxu2  ;;  %v161_v55 = vand.u32 2147483648, %v149_v60  ;;  %v159_v58 = vand.u32 2147483647, %v149_v60  ;;  %vm155_vm1 = vweird.f32 %v149_v60 }
  0xb1   :  { %1049 = vrcp.f32 %v172_v61  ;;  %v188_v41 = vadd.f32 %v142_v54, %v1519_v53  ;;  %vm178_vm4 = vweird.f32 %v172_v61  ;;  %v184_v47 = vand.u32 2147483648, %v172_v61 }
  0xb2   :  { %v162_v48 = vor.u32 1.1754944e-38, %v161_v55  ;;  %vm160_vm3 = vcmp.eq.f32.partialorder %v159_v58, 8.507059e+37  ;;  %v182_v35 = vand.u32 2147483647, %v172_v61 }
  0xb4   :  { %vm183_vm7 = vcmp.eq.f32.partialorder %v182_v35, 8.507059e+37  ;;  %v1855_v35 = vld [vmem:[#allocation11_spill] sm:$0xff] }
  0xb6   :  { %v1048_v62 = vpop.eup %1047 }
  0xb7   :  { %v1050_v63 = vpop.eup %1049  ;;  %v151_v42 = vmul.f32 %v1048_v62, %v149_v60  ;;  %vm156_vm0 = vweird.f32 %v1048_v62 }
  0xb8   :  { %v174_v51 = vmul.f32 %v1050_v63, %v172_v61  ;;  %vm157_vm2 = vmor %vm155_vm1, %vm156_vm0  ;;  %vm179_vm5 = vweird.f32 %v1050_v63  ;;  %v1018_v61 = vld [vmem:[%s1823_s0 + $0x1] ss:$8 sm:$0x7] }
  0xb9   :  { %v152_v50 = vsub.f32 1.0, %v151_v42  ;;  %vm180_vm6 = vmor %vm178_vm4, %vm179_vm5 }
  0xba   :  { %v175_v52 = vsub.f32 1.0, %v174_v51 }
  0xbb   :  { %v153_v56 = vmul.f32 %v1048_v62, %v152_v50 }
  0xbc   :  { %v176_v57 = vmul.f32 %v1050_v63, %v175_v52  ;;  %v185_v52 = vor.u32 1.1754944e-38, %v184_v47  ;;  %v1862_v47 = vld [vmem:[#allocation9_spill] sm:$0xff] }
  0xbd   :  { %v154_v59 = vadd.f32 %v1048_v62, %v153_v56 }
  0xbe   :  { %v177_v51 = vadd.f32 %v1050_v63, %v176_v57 }
  0xbf   :  { %v158_v42 = vsel %vm157_vm2, %v1048_v62, %v154_v59 }
  0xc0   :  { %v163_v38 = vsel %vm160_vm3, %v162_v48, %v158_v42  ;;  %v181_v46 = vsel %vm180_vm6, %v1050_v63, %v177_v51  ;;  %v1863_v48 = vld [vmem:[#allocation10_spill] sm:$0xff]  ;;  %v282_v63 = vrot.slane %v1018_v61, 1 }
  0xc1   :  { %v189_v36 = vmul.f32 %v188_v41, %v163_v38  ;;  %v186_v60 = vsel %vm183_vm7, %v185_v52, %v181_v46  ;;  %v1857_v38 = vld [vmem:[#allocation6_spill] sm:$0xff]  ;;  %v1859_v41 = vld [vmem:[#allocation7_spill] sm:$0xff]  ;;  %v1861_v46 = vld [vmem:[#allocation13_spill] sm:$0xff] }
  0xc2   :  { %v194_v54 = vsub.f32 1.0, %v186_v60  ;;  %v196_v49 = vmul.f32 %v186_v60, %v1373_v43  ;;  %v1860_v43 = vld [vmem:[#allocation8_spill] sm:$0xff] }
  0xc3   :  { %v192_v50 = vadd.f32 %v190_v39, %v189_v36  ;;  %v1856_v36 = vld [vmem:[#allocation5_spill] sm:$0xff]  ;;  %v1858_v39 = vld [vmem:[#allocation12_spill] sm:$0xff] }
  0xc5   :  { %1051 = vtanh.f32 %v192_v50 }
  0xcb   :  { %v1052_v56 = vpop.eup %1051 }
  0xcc   :  { %v195_v55 = vmul.f32 %v1052_v56, %v194_v54 }
  0xce   :  { %v1523_v62 = vadd.f32 %v196_v49, %v195_v55 }
  0xd0   :  { %198 = vst [vmem:[%s1827_s4] sm:$0x1] %v1523_v62  ;;  %217 = vmatmul.f32.vlgmr.msra.gmra.mxu3 %v1523_v62  ;;  %237 = vmatmul.f32.vlgmr.msrb.gmra.mxu0 %v1523_v62 }
  0xd1   :  { %257 = vmatmul.f32.vlgmr.msrb.gmra.mxu1 %v1523_v62  ;;  %473 = vmatpush.msra.mxu3 %v1265_v12 }
  0xd2   :  { %549 = vmatpush.msrb.mxu0 %v1230_v0  ;;  %569 = vmatpush.msrb.mxu1 %v1232_v1 }
  0xd3   :  { %474 = vmatpush.msra.mxu3 %v1270_v13 }
  0xd4   :  { %550 = vmatpush.msrb.mxu0 %v1234_v2  ;;  %570 = vmatpush.msrb.mxu1 %v1238_v3 }
  0xd5   :  { %475 = vmatpush.msra.mxu3 %v1280_v16 }
  0xd6   :  { %551 = vmatpush.msrb.mxu0 %v1240_v4  ;;  %571 = vmatpush.msrb.mxu1 %v1242_v5 }
  0xd7   :  { %476 = vmatpush.msra.mxu3 %v1290_v19 }
  0xd8   :  { %552 = vmatpush.msrb.mxu0 %v1247_v6  ;;  %572 = vmatpush.msrb.mxu1 %v1249_v7 }
  0xd9   :  { %477 = vmatpush.msra.mxu3 %v1300_v22 }
  0xda   :  { %553 = vmatpush.msrb.mxu0 %v1254_v8  ;;  %573 = vmatpush.msrb.mxu1 %v1256_v9 }
  0xdb   :  { %478 = vmatpush.msra.mxu3 %v1310_v25 }
  0xdc   :  { %554 = vmatpush.msrb.mxu0 %v1261_v10  ;;  %574 = vmatpush.msrb.mxu1 %v1263_v11 }
  0xdd   :  { %479 = vmatpush.msra.mxu3 %v1320_v28 }
  0xde   :  { %555 = vmatpush.msrb.mxu0 %v1272_v14  ;;  %575 = vmatpush.msrb.mxu1 %v1274_v15 }
  0xdf   :  { %480 = vmatpush.msra.mxu3 %v1330_v31 }
  0xe0   :  { %556 = vmatpush.msrb.mxu0 %v1282_v17  ;;  %576 = vmatpush.msrb.mxu1 %v1284_v18 }
  0xe1   :  { %481 = vmatpush.msra.mxu3 %v1340_v34 }
  0xe2   :  { %557 = vmatpush.msrb.mxu0 %v1292_v20  ;;  %577 = vmatpush.msrb.mxu1 %v1294_v21 }
  0xe3   :  { %482 = vmatpush.msra.mxu3 %v1350_v37 }
  0xe4   :  { %558 = vmatpush.msrb.mxu0 %v1302_v23  ;;  %578 = vmatpush.msrb.mxu1 %v1304_v24 }
  0xe5   :  { %483 = vmatpush.msra.mxu3 %v1360_v40 }
  0xe6   :  { %559 = vmatpush.msrb.mxu0 %v1312_v26  ;;  %579 = vmatpush.msrb.mxu1 %v1314_v27 }
  0xe7   :  { %484 = vmatpush.msra.mxu3 %v1376_v44 }
  0xe8   :  { %560 = vmatpush.msrb.mxu0 %v1322_v29  ;;  %580 = vmatpush.msrb.mxu1 %v1324_v30 }
  0xe9   :  { %485 = vmatpush.msra.mxu3 %v1383_v45 }
  0xea   :  { %561 = vmatpush.msrb.mxu0 %v1332_v32  ;;  %581 = vmatpush.msrb.mxu1 %v1334_v33 }
  0xeb   :  { %486 = vmatpush.msra.mxu3 %v1855_v35 }
  0xec   :  { %562 = vmatpush.msrb.mxu0 %v1856_v36  ;;  %582 = vmatpush.msrb.mxu1 %v1857_v38 }
  0xed   :  { %487 = vmatpush.msra.mxu3 %v1858_v39 }
  0xee   :  { %563 = vmatpush.msrb.mxu0 %v1859_v41  ;;  %583 = vmatpush.msrb.mxu1 %v1860_v43 }
  0xef   :  { %488 = vmatpush.msra.mxu3 %v1861_v46 }
  0xf0   :  { %564 = vmatpush.msrb.mxu0 %v1862_v47  ;;  %584 = vmatpush.msrb.mxu1 %v1863_v48 }
 0x14d   :  { %v238_v58 = vpop.f32.mrf.mxu0 }
 0x14e   :  { %v284_v57 = vadd.f32 %v282_v63, %v238_v58 }
 0x150   :  { %v1020_v59 = vmul.f32 -1.442695, %v284_v57 }
 0x152   :  { %1053 = vpow2.f32 %v1020_v59  ;;  %v258_v59 = vpop.f32.mrf.mxu1 }
 0x153   :  { %v218_v42 = vpop.f32.mrf.mxu3 }
 0x154   :  { %v261_v51 = vadd.f32 %v1018_v61, %v218_v42 }
 0x156   :  { %v1019_v50 = vmul.f32 -1.442695, %v261_v51 }
 0x158   :  { %v1054_v52 = vpop.eup %1053  ;;  %1055 = vpow2.f32 %v1019_v50  ;;  %v306_v50 = vrot.slane %v1018_v61, 2 }
 0x159   :  { %v288_v60 = vadd.f32 1.0, %v1054_v52  ;;  %v304_v52 = vadd.f32 %v258_v59, %v1519_v53  ;;  %v1872_v59 = vld [vmem:[#allocation10_spill] sm:$0xff] }
 0x15b   :  { %1057 = vrcp.f32 %v288_v60  ;;  %vm294_vm13 = vweird.f32 %v288_v60 }
 0x15e   :  { %v1056_v54 = vpop.eup %1055 }
 0x15f   :  { %v265_v56 = vadd.f32 1.0, %v1056_v54 }
 0x161   :  { %1059 = vrcp.f32 %v265_v56  ;;  %v1058_v55 = vpop.eup %1057  ;;  %v277_v41 = vand.u32 2147483648, %v265_v56  ;;  %v275_v58 = vand.u32 2147483647, %v265_v56  ;;  %vm271_vm9 = vweird.f32 %v265_v56 }
 0x162   :  { %v290_v49 = vmul.f32 %v1058_v55, %v288_v60  ;;  %vm295_vm12 = vweird.f32 %v1058_v55 }
 0x163   :  { %v278_v51 = vor.u32 1.1754944e-38, %v277_v41  ;;  %vm276_vm11 = vcmp.eq.f32.partialorder %v275_v58, 8.507059e+37  ;;  %vm296_vm14 = vmor %vm294_vm13, %vm295_vm12 }
 0x164   :  { %v291_v46 = vsub.f32 1.0, %v290_v49  ;;  %v300_v49 = vand.u32 2147483648, %v288_v60 }
 0x166   :  { %v292_v57 = vmul.f32 %v1058_v55, %v291_v46  ;;  %v301_v35 = vor.u32 1.1754944e-38, %v300_v49 }
 0x167   :  { %v1060_v48 = vpop.eup %1059 }
 0x168   :  { %v267_v47 = vmul.f32 %v1060_v48, %v265_v56  ;;  %vm272_vm8 = vweird.f32 %v1060_v48  ;;  %v293_v39 = vadd.f32 %v1058_v55, %v292_v57  ;;  %v1871_v57 = vld [vmem:[#allocation9_spill] sm:$0xff] }
 0x169   :  { %vm273_vm10 = vmor %vm271_vm9, %vm272_vm8 }
 0x16a   :  { %v268_v43 = vsub.f32 1.0, %v267_v47  ;;  %v297_v46 = vsel %vm296_vm14, %v1058_v55, %v293_v39  ;;  %v1868_v39 = vld [vmem:[#allocation7_spill] sm:$0xff]  ;;  %v1870_v55 = vld [vmem:[#allocation13_spill] sm:$0xff] }
 0x16c   :  { %v269_v63 = vmul.f32 %v1060_v48, %v268_v43  ;;  %v298_v43 = vand.u32 2147483647, %v288_v60  ;;  %v1869_v60 = vld [vmem:[#allocation8_spill] sm:$0xff] }
 0x16e   :  { %v270_v42 = vadd.f32 %v1060_v48, %v269_v63  ;;  %vm299_vm15 = vcmp.eq.f32.partialorder %v298_v43, 8.507059e+37 }
 0x16f   :  { %v302_v56 = vsel %vm299_vm15, %v301_v35, %v297_v46  ;;  %v1865_v35 = vld [vmem:[#allocation5_spill] sm:$0xff] }
 0x170   :  { %v274_v54 = vsel %vm273_vm10, %v1060_v48, %v270_v42  ;;  %v310_v41 = vsub.f32 1.0, %v302_v56  ;;  %v312_v48 = vmul.f32 %v302_v56, %v1523_v62  ;;  %v1864_v62 = vld [vmem:[#allocation11_spill] sm:$0xff] }
 0x171   :  { %v279_v38 = vsel %vm276_vm11, %v278_v51, %v274_v54  ;;  %v1021_v42 = vld [vmem:[%s1823_s0 + $0x2] ss:$8 sm:$0x7] }
 0x172   :  { %v305_v47 = vmul.f32 %v304_v52, %v279_v38  ;;  %v1867_v38 = vld [vmem:[#allocation12_spill] sm:$0xff]  ;;  %v398_v51 = vrot.slane %v1021_v42, 1 }
 0x174   :  { %v308_v36 = vadd.f32 %v306_v50, %v305_v47 }
 0x176   :  { %1061 = vtanh.f32 %v308_v36  ;;  %v1866_v36 = vld [vmem:[#allocation6_spill] sm:$0xff] }
 0x17c   :  { %v1062_v61 = vpop.eup %1061 }
 0x17d   :  { %v311_v63 = vmul.f32 %v1062_v61, %v310_v41 }
 0x17f   :  { %v1585_v58 = vadd.f32 %v312_v48, %v311_v63 }
 0x181   :  { %314 = vst [vmem:[%s1827_s4 + $0x1] sm:$0x1] %v1585_v58  ;;  %333 = vmatmul.f32.vlgmr.msrb.gmra.mxu2 %v1585_v58  ;;  %353 = vmatmul.f32.vlgmr.msrb.gmra.mxu3 %v1585_v58 }
 0x182   :  { %373 = vmatmul.f32.vlgmr.msra.gmra.mxu0 %v1585_v58  ;;  %589 = vmatpush.msrb.mxu2 %v1265_v12 }
 0x183   :  { %665 = vmatpush.msrb.mxu3 %v1230_v0  ;;  %685 = vmatpush.msra.mxu0 %v1232_v1 }
 0x184   :  { %590 = vmatpush.msrb.mxu2 %v1270_v13 }
 0x185   :  { %666 = vmatpush.msrb.mxu3 %v1234_v2  ;;  %686 = vmatpush.msra.mxu0 %v1238_v3 }
 0x186   :  { %591 = vmatpush.msrb.mxu2 %v1280_v16 }
 0x187   :  { %667 = vmatpush.msrb.mxu3 %v1240_v4  ;;  %687 = vmatpush.msra.mxu0 %v1242_v5 }
 0x188   :  { %592 = vmatpush.msrb.mxu2 %v1290_v19 }
 0x189   :  { %668 = vmatpush.msrb.mxu3 %v1247_v6  ;;  %688 = vmatpush.msra.mxu0 %v1249_v7 }
 0x18a   :  { %593 = vmatpush.msrb.mxu2 %v1300_v22 }
 0x18b   :  { %669 = vmatpush.msrb.mxu3 %v1254_v8  ;;  %689 = vmatpush.msra.mxu0 %v1256_v9 }
 0x18c   :  { %594 = vmatpush.msrb.mxu2 %v1310_v25 }
 0x18d   :  { %670 = vmatpush.msrb.mxu3 %v1261_v10  ;;  %690 = vmatpush.msra.mxu0 %v1263_v11 }
 0x18e   :  { %595 = vmatpush.msrb.mxu2 %v1320_v28 }
 0x18f   :  { %671 = vmatpush.msrb.mxu3 %v1272_v14  ;;  %691 = vmatpush.msra.mxu0 %v1274_v15 }
 0x190   :  { %596 = vmatpush.msrb.mxu2 %v1330_v31 }
 0x191   :  { %672 = vmatpush.msrb.mxu3 %v1282_v17  ;;  %692 = vmatpush.msra.mxu0 %v1284_v18 }
 0x192   :  { %597 = vmatpush.msrb.mxu2 %v1340_v34 }
 0x193   :  { %673 = vmatpush.msrb.mxu3 %v1292_v20  ;;  %693 = vmatpush.msra.mxu0 %v1294_v21 }
 0x194   :  { %598 = vmatpush.msrb.mxu2 %v1350_v37 }
 0x195   :  { %674 = vmatpush.msrb.mxu3 %v1302_v23  ;;  %694 = vmatpush.msra.mxu0 %v1304_v24 }
 0x196   :  { %599 = vmatpush.msrb.mxu2 %v1360_v40 }
 0x197   :  { %675 = vmatpush.msrb.mxu3 %v1312_v26  ;;  %695 = vmatpush.msra.mxu0 %v1314_v27 }
 0x198   :  { %600 = vmatpush.msrb.mxu2 %v1376_v44 }
 0x199   :  { %676 = vmatpush.msrb.mxu3 %v1322_v29  ;;  %696 = vmatpush.msra.mxu0 %v1324_v30 }
 0x19a   :  { %601 = vmatpush.msrb.mxu2 %v1383_v45 }
 0x19b   :  { %677 = vmatpush.msrb.mxu3 %v1332_v32  ;;  %697 = vmatpush.msra.mxu0 %v1334_v33 }
 0x19c   :  { %602 = vmatpush.msrb.mxu2 %v1864_v62 }
 0x19d   :  { %678 = vmatpush.msrb.mxu3 %v1865_v35  ;;  %698 = vmatpush.msra.mxu0 %v1866_v36 }
 0x19e   :  { %603 = vmatpush.msrb.mxu2 %v1867_v38 }
 0x19f   :  { %679 = vmatpush.msrb.mxu3 %v1868_v39  ;;  %699 = vmatpush.msra.mxu0 %v1869_v60 }
 0x1a0   :  { %604 = vmatpush.msrb.mxu2 %v1870_v55 }
 0x1a1   :  { %680 = vmatpush.msrb.mxu3 %v1871_v57  ;;  %700 = vmatpush.msra.mxu0 %v1872_v59 }
 0x204   :  { %v334_v50 = vpop.f32.mrf.mxu2  ;;  %v354_v52 = vpop.f32.mrf.mxu3 }
 0x205   :  { %v377_v54 = vadd.f32 %v1021_v42, %v334_v50  ;;  %v400_v49 = vadd.f32 %v398_v51, %v354_v52  ;;  %v374_v50 = vpop.f32.mrf.mxu0 }
 0x207   :  { %v1022_v47 = vmul.f32 -1.442695, %v377_v54  ;;  %v1023_v43 = vmul.f32 -1.442695, %v400_v49 }
 0x209   :  { %1063 = vpow2.f32 %v1022_v47  ;;  %v420_v47 = vadd.f32 %v374_v50, %v1519_v53 }
 0x20a   :  { %1065 = vpow2.f32 %v1023_v43 }
 0x20f   :  { %v1064_v46 = vpop.eup %1063 }
 0x210   :  { %v1066_v56 = vpop.eup %1065  ;;  %v381_v41 = vadd.f32 1.0, %v1064_v46  ;;  %v422_v46 = vrot.slane %v1021_v42, 2 }
 0x211   :  { %v404_v61 = vadd.f32 1.0, %v1066_v56 }
 0x212   :  { %1067 = vrcp.f32 %v381_v41  ;;  %v393_v60 = vand.u32 2147483648, %v381_v41  ;;  %v391_v51 = vand.u32 2147483647, %v381_v41  ;;  %vm387_vm1 = vweird.f32 %v381_v41 }
 0x213   :  { %1069 = vrcp.f32 %v404_v61  ;;  %v416_v35 = vand.u32 2147483648, %v404_v61  ;;  %vm410_vm5 = vweird.f32 %v404_v61 }
 0x214   :  { %v394_v49 = vor.u32 1.1754944e-38, %v393_v60  ;;  %vm392_vm3 = vcmp.eq.f32.partialorder %v391_v51, 8.507059e+37 }
 0x218   :  { %v1068_v63 = vpop.eup %1067 }
 0x219   :  { %v1070_v48 = vpop.eup %1069  ;;  %v383_v59 = vmul.f32 %v1068_v63, %v381_v41  ;;  %vm388_vm0 = vweird.f32 %v1068_v63 }
 0x21a   :  { %v406_v57 = vmul.f32 %v1070_v48, %v404_v61  ;;  %vm389_vm2 = vmor %vm387_vm1, %vm388_vm0  ;;  %vm411_vm4 = vweird.f32 %v1070_v48 }
 0x21b   :  { %v384_v55 = vsub.f32 1.0, %v383_v59  ;;  %vm412_vm6 = vmor %vm410_vm5, %vm411_vm4 }
 0x21c   :  { %v407_v39 = vsub.f32 1.0, %v406_v57 }
 0x21d   :  { %v385_v38 = vmul.f32 %v1068_v63, %v384_v55  ;;  %v414_v55 = vand.u32 2147483647, %v404_v61 }
 0x21e   :  { %v408_v52 = vmul.f32 %v1070_v48, %v407_v39 }
 0x21f   :  { %v386_v54 = vadd.f32 %v1068_v63, %v385_v38  ;;  %v417_v38 = vor.u32 1.1754944e-38, %v416_v35  ;;  %vm415_vm7 = vcmp.eq.f32.partialorder %v414_v55, 8.507059e+37  ;;  %v1721_v55 = vld [vmem:[#allocation2 + $0x160] sm:$0xff] }
 0x220   :  { %v409_v36 = vadd.f32 %v1070_v48, %v408_v52 }
 0x221   :  { %v390_v43 = vsel %vm389_vm2, %v1068_v63, %v386_v54 }
 0x222   :  { %v395_v56 = vsel %vm392_vm3, %v394_v49, %v390_v43  ;;  %v413_v62 = vsel %vm412_vm6, %v1070_v48, %v409_v36 }
 0x223   :  { %v421_v59 = vmul.f32 %v420_v47, %v395_v56  ;;  %v418_v39 = vsel %vm415_vm7, %v417_v38, %v413_v62  ;;  %v1124_v56 = vld [vmem:[#allocation2 + $0x168] sm:$0xff]  ;;  %v1128_v38 = vld [vmem:[#allocation2 + $0x158] sm:$0xff] }
 0x224   :  { %v426_v60 = vsub.f32 1.0, %v418_v39  ;;  %v428_v63 = vmul.f32 %v418_v39, %v1585_v58  ;;  %v1724_v39 = vld [vmem:[#allocation2 + $0x148] sm:$0xff] }
 0x225   :  { %v424_v57 = vadd.f32 %v422_v46, %v421_v59  ;;  %v1718_v46 = vld [vmem:[#allocation2 + $0x178] sm:$0xff]  ;;  %v1125_v59 = vld [vmem:[#allocation2 + $0x170] sm:$0xff] }
 0x227   :  { %1071 = vtanh.f32 %v424_v57  ;;  %v1127_v57 = vld [vmem:[#allocation2 + $0x150] sm:$0xff] }
 0x22d   :  { %v1072_v41 = vpop.eup %1071 }
 0x22e   :  { %v427_v50 = vmul.f32 %v1072_v41, %v426_v60  ;;  %v1130_v60 = vld [vmem:[#allocation2 + $0x138] sm:$0xff]  ;;  %v1131_v41 = vld [vmem:[#allocation2 + $0x140] sm:$0xff] }
 0x230   :  { %v1647_v42 = vadd.f32 %v428_v63, %v427_v50  ;;  %v1727_v50 = vld [vmem:[#allocation2 + $0x130] sm:$0xff]  ;;  %v1133_v63 = vld [vmem:[#allocation2 + $0x120] sm:$0xff] }
 0x232   :  { %430 = vst [vmem:[%s1827_s4 + $0x2] sm:$0x1] %v1647_v42  ;;  %449 = vmatmul.f32.vlgmr.msra.gmra.mxu1 %v1647_v42  ;;  %469 = vmatmul.f32.vlgmr.msra.gmra.mxu2 %v1647_v42 }
 0x233   :  { %489 = vmatmul.f32.vlgmr.msra.gmra.mxu3 %v1647_v42  ;;  %705 = vmatpush.msra.mxu1 %v1265_v12 }
 0x234   :  { %781 = vmatpush.msra.mxu2 %v1230_v0  ;;  %801 = vmatpush.msra.mxu3 %v1232_v1  ;;  %v1873_v0 = vld [vmem:[#allocation11_spill] sm:$0xff]  ;;  %v1874_v1 = vld [vmem:[#allocation5_spill] sm:$0xff] }
 0x235   :  { %706 = vmatpush.msra.mxu1 %v1270_v13 }
 0x236   :  { %782 = vmatpush.msra.mxu2 %v1234_v2  ;;  %802 = vmatpush.msra.mxu3 %v1238_v3  ;;  %v1875_v2 = vld [vmem:[#allocation6_spill] sm:$0xff]  ;;  %v1876_v3 = vld [vmem:[#allocation12_spill] sm:$0xff] }
 0x237   :  { %707 = vmatpush.msra.mxu1 %v1280_v16 }
 0x238   :  { %783 = vmatpush.msra.mxu2 %v1240_v4  ;;  %803 = vmatpush.msra.mxu3 %v1242_v5  ;;  %v1877_v4 = vld [vmem:[#allocation7_spill] sm:$0xff]  ;;  %v1878_v5 = vld [vmem:[#allocation8_spill] sm:$0xff] }
 0x239   :  { %708 = vmatpush.msra.mxu1 %v1290_v19 }
 0x23a   :  { %784 = vmatpush.msra.mxu2 %v1247_v6  ;;  %804 = vmatpush.msra.mxu3 %v1249_v7  ;;  %v1879_v6 = vld [vmem:[#allocation13_spill] sm:$0xff] }
 0x23b   :  { %709 = vmatpush.msra.mxu1 %v1300_v22  ;;  %v1880_v7 = vld [vmem:[#allocation9_spill] sm:$0xff] }
 0x23c   :  { %785 = vmatpush.msra.mxu2 %v1254_v8  ;;  %805 = vmatpush.msra.mxu3 %v1256_v9  ;;  %v1881_v8 = vld [vmem:[#allocation10_spill] sm:$0xff] }
 0x23d   :  { %710 = vmatpush.msra.mxu1 %v1310_v25  ;;  %v1024_v9 = vld [vmem:[%s1823_s0 + $0x3] ss:$8 sm:$0x7] }
 0x23e   :  { %786 = vmatpush.msra.mxu2 %v1261_v10  ;;  %806 = vmatpush.msra.mxu3 %v1263_v11  ;;  %v514_v13 = vrot.slane %v1024_v9, 1 }
 0x23f   :  { %711 = vmatpush.msra.mxu1 %v1320_v28 }
 0x240   :  { %787 = vmatpush.msra.mxu2 %v1272_v14  ;;  %807 = vmatpush.msra.mxu3 %v1274_v15 }
 0x241   :  { %712 = vmatpush.msra.mxu1 %v1330_v31  ;;  %v538_v31 = vrot.slane %v1024_v9, 2 }
 0x242   :  { %788 = vmatpush.msra.mxu2 %v1282_v17  ;;  %808 = vmatpush.msra.mxu3 %v1284_v18 }
 0x243   :  { %713 = vmatpush.msra.mxu1 %v1340_v34 }
 0x244   :  { %789 = vmatpush.msra.mxu2 %v1292_v20  ;;  %809 = vmatpush.msra.mxu3 %v1294_v21 }
 0x245   :  { %714 = vmatpush.msra.mxu1 %v1350_v37 }
 0x246   :  { %790 = vmatpush.msra.mxu2 %v1302_v23  ;;  %810 = vmatpush.msra.mxu3 %v1304_v24 }
 0x247   :  { %715 = vmatpush.msra.mxu1 %v1360_v40 }
 0x248   :  { %791 = vmatpush.msra.mxu2 %v1312_v26  ;;  %811 = vmatpush.msra.mxu3 %v1314_v27 }
 0x249   :  { %716 = vmatpush.msra.mxu1 %v1376_v44 }
 0x24a   :  { %792 = vmatpush.msra.mxu2 %v1322_v29  ;;  %812 = vmatpush.msra.mxu3 %v1324_v30 }
 0x24b   :  { %717 = vmatpush.msra.mxu1 %v1383_v45 }
 0x24c   :  { %793 = vmatpush.msra.mxu2 %v1332_v32  ;;  %813 = vmatpush.msra.mxu3 %v1334_v33 }
 0x24d   :  { %718 = vmatpush.msra.mxu1 %v1873_v0  ;;  %v1730_v0 = vld [vmem:[#allocation2 + $0x118] sm:$0xff] }
 0x24e   :  { %794 = vmatpush.msra.mxu2 %v1874_v1  ;;  %814 = vmatpush.msra.mxu3 %v1875_v2  ;;  %v1136_v1 = vld [vmem:[#allocation2 + $0x108] sm:$0xff]  ;;  %v1137_v2 = vld [vmem:[#allocation2 + $0x110] sm:$0xff] }
 0x24f   :  { %719 = vmatpush.msra.mxu1 %v1876_v3  ;;  %v1733_v3 = vld [vmem:[#allocation2 + $0x100] sm:$0xff] }
 0x250   :  { %795 = vmatpush.msra.mxu2 %v1877_v4  ;;  %815 = vmatpush.msra.mxu3 %v1878_v5  ;;  %v1139_v4 = vld [vmem:[#allocation2 + $0xf0] sm:$0xff]  ;;  %v1140_v5 = vld [vmem:[#allocation2 + $0xf8] sm:$0xff] }
 0x251   :  { %720 = vmatpush.msra.mxu1 %v1879_v6  ;;  %v1736_v6 = vld [vmem:[#allocation2 + $0xe8] sm:$0xff] }
 0x252   :  { %796 = vmatpush.msra.mxu2 %v1880_v7  ;;  %816 = vmatpush.msra.mxu3 %v1881_v8  ;;  %v1142_v7 = vld [vmem:[#allocation2 + $0xd8] sm:$0xff]  ;;  %v1143_v8 = vld [vmem:[#allocation2 + $0xe0] sm:$0xff] }
 0x2af   :  { %v450_v10 = vpop.f32.mrf.mxu1 }
 0x2b0   :  { %v493_v11 = vadd.f32 %v1024_v9, %v450_v10  ;;  %v1739_v9 = vld [vmem:[#allocation2 + $0xd0] sm:$0xff]  ;;  %v1145_v10 = vld [vmem:[#allocation2 + $0xc0] sm:$0xff] }
 0x2b2   :  { %v1025_v12 = vmul.f32 -1.442695, %v493_v11  ;;  %v1146_v11 = vld [vmem:[#allocation2 + $0xc8] sm:$0xff] }
 0x2b4   :  { %1073 = vpow2.f32 %v1025_v12  ;;  %v1742_v12 = vld [vmem:[#allocation2 + $0xb8] sm:$0xff] }
 0x2b5   :  { %v470_v14 = vpop.f32.mrf.mxu2 }
 0x2b6   :  { %v516_v15 = vadd.f32 %v514_v13, %v470_v14  ;;  %v490_v28 = vpop.f32.mrf.mxu3  ;;  %v1148_v13 = vld [vmem:[#allocation2 + $0xa8] sm:$0xff]  ;;  %v1149_v14 = vld [vmem:[#allocation2 + $0xb0] sm:$0xff] }
 0x2b7   :  { %v536_v37 = vadd.f32 %v490_v28, %v1519_v53  ;;  %v1163_v28 = vld [vmem:[#allocation2 + $0x30] sm:$0xff] }
 0x2b8   :  { %v1026_v16 = vmul.f32 -1.442695, %v516_v15  ;;  %v1745_v15 = vld [vmem:[#allocation2 + $0xa0] sm:$0xff] }
 0x2ba   :  { %v1074_v17 = vpop.eup %1073  ;;  %1075 = vpow2.f32 %v1026_v16  ;;  %v1151_v16 = vld [vmem:[#allocation2 + $0x90] sm:$0xff] }
 0x2bb   :  { %v497_v18 = vadd.f32 1.0, %v1074_v17  ;;  %v1152_v17 = vld [vmem:[#allocation2 + $0x98] sm:$0xff] }
 0x2bd   :  { %1077 = vrcp.f32 %v497_v18  ;;  %v509_v24 = vand.u32 2147483648, %v497_v18  ;;  %v507_v26 = vand.u32 2147483647, %v497_v18  ;;  %vm503_vm9 = vweird.f32 %v497_v18 }
 0x2bf   :  { %v510_v32 = vor.u32 1.1754944e-38, %v509_v24  ;;  %vm508_vm11 = vcmp.eq.f32.partialorder %v507_v26, 8.507059e+37  ;;  %v1754_v24 = vld [vmem:[#allocation2 + $0x58] sm:$0xff]  ;;  %v1161_v26 = vld [vmem:[#allocation2 + $0x50] sm:$0xff] }
 0x2c0   :  { %v1076_v19 = vpop.eup %1075 }
 0x2c1   :  { %v520_v20 = vadd.f32 1.0, %v1076_v19  ;;  %v1154_v19 = vld [vmem:[#allocation2 + $0x78] sm:$0xff] }
 0x2c3   :  { %v1078_v21 = vpop.eup %1077  ;;  %1079 = vrcp.f32 %v520_v20  ;;  %v532_v45 = vand.u32 2147483648, %v520_v20  ;;  %v530_v62 = vand.u32 2147483647, %v520_v20  ;;  %vm526_vm13 = vweird.f32 %v520_v20 }
 0x2c4   :  { %v499_v22 = vmul.f32 %v1078_v21, %v497_v18  ;;  %vm504_vm8 = vweird.f32 %v1078_v21  ;;  %v1748_v18 = vld [vmem:[#allocation2 + $0x88] sm:$0xff] }
 0x2c5   :  { %vm505_vm10 = vmor %vm503_vm9, %vm504_vm8  ;;  %v533_v61 = vor.u32 1.1754944e-38, %v532_v45  ;;  %vm531_vm15 = vcmp.eq.f32.partialorder %v530_v62, 8.507059e+37 }
 0x2c6   :  { %v500_v23 = vsub.f32 1.0, %v499_v22  ;;  %v1157_v22 = vld [vmem:[#allocation2 + $0x60] sm:$0xff] }
 0x2c8   :  { %v501_v25 = vmul.f32 %v1078_v21, %v500_v23  ;;  %v1158_v23 = vld [vmem:[#allocation2 + $0x68] sm:$0xff] }
 0x2c9   :  { %v1080_v27 = vpop.eup %1079 }
 0x2ca   :  { %v522_v29 = vmul.f32 %v1080_v27, %v520_v20  ;;  %v502_v30 = vadd.f32 %v1078_v21, %v501_v25  ;;  %vm527_vm12 = vweird.f32 %v1080_v27  ;;  %v1155_v20 = vld [vmem:[#allocation2 + $0x80] sm:$0xff]  ;;  %v1160_v25 = vld [vmem:[#allocation2 + $0x48] sm:$0xff] }
 0x2cb   :  { %vm528_vm14 = vmor %vm526_vm13, %vm527_vm12 }
 0x2cc   :  { %v523_v33 = vsub.f32 1.0, %v522_v29  ;;  %v506_v34 = vsel %vm505_vm10, %v1078_v21, %v502_v30  ;;  %v1751_v21 = vld [vmem:[#allocation2 + $0x70] sm:$0xff]  ;;  %v1164_v29 = vld [vmem:[#allocation2 + $0x38] sm:$0xff]  ;;  %v1760_v30 = vld [vmem:[#allocation2 + $0x28] sm:$0xff] }
 0x2cd   :  { %v511_v40 = vsel %vm508_vm11, %v510_v32, %v506_v34  ;;  %v1167_v32 = vld [vmem:[#allocation2 + $0x20] sm:$0xff] }
 0x2ce   :  { %v524_v44 = vmul.f32 %v1080_v27, %v523_v33  ;;  %v537_v58 = vmul.f32 %v536_v37, %v511_v40  ;;  %v1763_v33 = vld [vmem:[#allocation2 + $0x10] sm:$0xff]  ;;  %v1169_v34 = vld [vmem:[#allocation2] sm:$0xff]  ;;  %v1170_v37 = vld [vmem:[#allocation2 + $0x8] sm:$0xff] }
 0x2cf   :  { %v1027_v40 = vld [vmem:[%s1823_s0 + $0x4] ss:$8 sm:$0x7] }
 0x2d0   :  { %v525_v35 = vadd.f32 %v1080_v27, %v524_v44  ;;  %v540_v36 = vadd.f32 %v538_v31, %v537_v58  ;;  %v1166_v31 = vld [vmem:[#allocation2 + $0x18] sm:$0xff]  ;;  %v630_v44 = vrot.slane %v1027_v40, 1 }
 0x2d2   :  { %v529_v48 = vsel %vm528_vm14, %v1080_v27, %v525_v35  ;;  %1081 = vtanh.f32 %v540_v36  ;;  %v1757_v27 = vld [vmem:[#allocation2 + $0x40] sm:$0xff] }
 0x2d3   :  { %v534_v51 = vsel %vm531_vm15, %v533_v61, %v529_v48 }
 0x2d4   :  { %v542_v52 = vsub.f32 1.0, %v534_v51  ;;  %v544_v47 = vmul.f32 %v534_v51, %v1647_v42  ;;  %v1134_v42 = vld [vmem:[#allocation2 + $0x128] sm:$0xff] }
 0x2d8   :  { %v1082_v54 = vpop.eup %1081 }
 0x2d9   :  { %v543_v49 = vmul.f32 %v1082_v54, %v542_v52 }
 0x2db   :  { %v1709_v43 = vadd.f32 %v544_v47, %v543_v49 }
 0x2dd   :  { %546 = vst [vmem:[%s1827_s4 + $0x3] sm:$0x1] %v1709_v43  ;;  %565 = vmatmul.f32.vlgmr.msrb.gmra.mxu0 %v1709_v43  ;;  %585 = vmatmul.f32.vlgmr.msrb.gmra.mxu1 %v1709_v43 }
 0x2de   :  { %605 = vmatmul.f32.vlgmr.msrb.gmra.mxu2 %v1709_v43  ;;  %821 = vmatpush.msrb.mxu0 %v1718_v46 }
 0x2df   :  { %897 = vmatpush.msrb.mxu1 %v1124_v56  ;;  %917 = vmatpush.msrb.mxu2 %v1125_v59 }
 0x2e0   :  { %822 = vmatpush.msrb.mxu0 %v1721_v55 }
 0x2e1   :  { %898 = vmatpush.msrb.mxu1 %v1127_v57  ;;  %918 = vmatpush.msrb.mxu2 %v1128_v38 }
 0x2e2   :  { %823 = vmatpush.msrb.mxu0 %v1724_v39 }
 0x2e3   :  { %899 = vmatpush.msrb.mxu1 %v1130_v60  ;;  %919 = vmatpush.msrb.mxu2 %v1131_v41 }
 0x2e4   :  { %824 = vmatpush.msrb.mxu0 %v1727_v50 }
 0x2e5   :  { %900 = vmatpush.msrb.mxu1 %v1133_v63  ;;  %920 = vmatpush.msrb.mxu2 %v1134_v42 }
 0x2e6   :  { %825 = vmatpush.msrb.mxu0 %v1730_v0 }
 0x2e7   :  { %901 = vmatpush.msrb.mxu1 %v1136_v1  ;;  %921 = vmatpush.msrb.mxu2 %v1137_v2 }
 0x2e8   :  { %826 = vmatpush.msrb.mxu0 %v1733_v3 }
 0x2e9   :  { %902 = vmatpush.msrb.mxu1 %v1139_v4  ;;  %922 = vmatpush.msrb.mxu2 %v1140_v5  ;;  %v654_v5 = vrot.slane %v1027_v40, 2 }
 0x2ea   :  { %827 = vmatpush.msrb.mxu0 %v1736_v6 }
 0x2eb   :  { %903 = vmatpush.msrb.mxu1 %v1142_v7  ;;  %923 = vmatpush.msrb.mxu2 %v1143_v8 }
 0x2ec   :  { %828 = vmatpush.msrb.mxu0 %v1739_v9 }
 0x2ed   :  { %904 = vmatpush.msrb.mxu1 %v1145_v10  ;;  %924 = vmatpush.msrb.mxu2 %v1146_v11 }
 0x2ee   :  { %829 = vmatpush.msrb.mxu0 %v1742_v12 }
 0x2ef   :  { %905 = vmatpush.msrb.mxu1 %v1148_v13  ;;  %925 = vmatpush.msrb.mxu2 %v1149_v14 }
 0x2f0   :  { %830 = vmatpush.msrb.mxu0 %v1745_v15 }
 0x2f1   :  { %906 = vmatpush.msrb.mxu1 %v1151_v16  ;;  %926 = vmatpush.msrb.mxu2 %v1152_v17 }
 0x2f2   :  { %831 = vmatpush.msrb.mxu0 %v1748_v18 }
 0x2f3   :  { %907 = vmatpush.msrb.mxu1 %v1154_v19  ;;  %927 = vmatpush.msrb.mxu2 %v1155_v20 }
 0x2f4   :  { %832 = vmatpush.msrb.mxu0 %v1751_v21 }
 0x2f5   :  { %908 = vmatpush.msrb.mxu1 %v1157_v22  ;;  %928 = vmatpush.msrb.mxu2 %v1158_v23 }
 0x2f6   :  { %833 = vmatpush.msrb.mxu0 %v1754_v24 }
 0x2f7   :  { %909 = vmatpush.msrb.mxu1 %v1160_v25  ;;  %929 = vmatpush.msrb.mxu2 %v1161_v26 }
 0x2f8   :  { %834 = vmatpush.msrb.mxu0 %v1757_v27 }
 0x2f9   :  { %910 = vmatpush.msrb.mxu1 %v1163_v28  ;;  %930 = vmatpush.msrb.mxu2 %v1164_v29 }
 0x2fa   :  { %835 = vmatpush.msrb.mxu0 %v1760_v30 }
 0x2fb   :  { %911 = vmatpush.msrb.mxu1 %v1166_v31  ;;  %931 = vmatpush.msrb.mxu2 %v1167_v32 }
 0x2fc   :  { %836 = vmatpush.msrb.mxu0 %v1763_v33 }
 0x2fd   :  { %912 = vmatpush.msrb.mxu1 %v1169_v34  ;;  %932 = vmatpush.msrb.mxu2 %v1170_v37 }
 0x35a   :  { %v566_v45 = vpop.f32.mrf.mxu0  ;;  %v586_v58 = vpop.f32.mrf.mxu1 }
 0x35b   :  { %v609_v62 = vadd.f32 %v1027_v40, %v566_v45  ;;  %v632_v35 = vadd.f32 %v630_v44, %v586_v58 }
 0x35d   :  { %v1028_v36 = vmul.f32 -1.442695, %v609_v62  ;;  %v1029_v61 = vmul.f32 -1.442695, %v632_v35  ;;  %v1802_v62 = vld [vmem:[%s1825_s2] sm:$0x1] }
 0x35f   :  { %1083 = vpow2.f32 %v1028_v36 }
 0x360   :  { %1085 = vpow2.f32 %v1029_v61 }
 0x361   :  { %v606_v1 = vpop.f32.mrf.mxu2 }
 0x362   :  { %v652_v8 = vadd.f32 %v606_v1, %v1519_v53 }
 0x365   :  { %v1084_v48 = vpop.eup %1083 }
 0x366   :  { %v1086_v51 = vpop.eup %1085  ;;  %v613_v52 = vadd.f32 1.0, %v1084_v48 }
 0x367   :  { %v636_v54 = vadd.f32 1.0, %v1086_v51 }
 0x368   :  { %1087 = vrcp.f32 %v613_v52  ;;  %v625_v60 = vand.u32 2147483648, %v613_v52  ;;  %v623_v63 = vand.u32 2147483647, %v613_v52  ;;  %vm619_vm1 = vweird.f32 %v613_v52 }
 0x369   :  { %1089 = vrcp.f32 %v636_v54  ;;  %v648_v13 = vand.u32 2147483648, %v636_v54  ;;  %vm642_vm5 = vweird.f32 %v636_v54  ;;  %v646_v16 = vand.u32 2147483647, %v636_v54 }
 0x36a   :  { %v626_v4 = vor.u32 1.1754944e-38, %v625_v60  ;;  %vm624_vm3 = vcmp.eq.f32.partialorder %v623_v63, 8.507059e+37 }
 0x36b   :  { %v649_v20 = vor.u32 1.1754944e-38, %v648_v13  ;;  %vm647_vm7 = vcmp.eq.f32.partialorder %v646_v16, 8.507059e+37 }
 0x36e   :  { %v1088_v49 = vpop.eup %1087 }
 0x36f   :  { %v1090_v47 = vpop.eup %1089  ;;  %v615_v56 = vmul.f32 %v1088_v49, %v613_v52  ;;  %vm620_vm0 = vweird.f32 %v1088_v49 }
 0x370   :  { %v638_v59 = vmul.f32 %v1090_v47, %v636_v54  ;;  %vm621_vm2 = vmor %vm619_vm1, %vm620_vm0  ;;  %vm643_vm4 = vweird.f32 %v1090_v47 }
 0x371   :  { %v616_v57 = vsub.f32 1.0, %v615_v56  ;;  %vm644_vm6 = vmor %vm642_vm5, %vm643_vm4 }
 0x372   :  { %v639_v38 = vsub.f32 1.0, %v638_v59 }
 0x373   :  { %v617_v41 = vmul.f32 %v1088_v49, %v616_v57 }
 0x374   :  { %v640_v42 = vmul.f32 %v1090_v47, %v639_v38 }
 0x375   :  { %v618_v2 = vadd.f32 %v1088_v49, %v617_v41 }
 0x376   :  { %v641_v10 = vadd.f32 %v1090_v47, %v640_v42  ;;  %v1033_v42 = vld [vmem:[%s1823_s0 + $0x6] ss:$8 sm:$0x7] }
 0x377   :  { %v622_v7 = vsel %vm621_vm2, %v1088_v49, %v618_v2  ;;  %v862_v1 = vrot.slane %v1033_v42, 1 }
 0x378   :  { %v627_v11 = vsel %vm624_vm3, %v626_v4, %v622_v7  ;;  %v645_v19 = vsel %vm644_vm6, %v1090_v47, %v641_v10 }
 0x379   :  { %v653_v14 = vmul.f32 %v652_v8, %v627_v11  ;;  %v650_v22 = vsel %vm647_vm7, %v649_v20, %v645_v19 }
 0x37a   :  { %v658_v23 = vsub.f32 1.0, %v650_v22  ;;  %v660_v28 = vmul.f32 %v650_v22, %v1709_v43  ;;  %v1030_v43 = vld [vmem:[%s1823_s0 + $0x5] ss:$8 sm:$0x7] }
 0x37b   :  { %v656_v17 = vadd.f32 %v654_v5, %v653_v14  ;;  %v770_v58 = vrot.slane %v1030_v43, 2 }
 0x37d   :  { %1091 = vtanh.f32 %v656_v17 }
 0x383   :  { %v1092_v25 = vpop.eup %1091 }
 0x384   :  { %v659_v26 = vmul.f32 %v1092_v25, %v658_v23 }
 0x386   :  { %v1771_v53 = vadd.f32 %v660_v28, %v659_v26 }
 0x388   :  { %662 = vst [vmem:[%s1827_s4 + $0x4] sm:$0x1] %v1771_v53  ;;  %681 = vmatmul.f32.vlgmr.msrb.gmra.mxu3 %v1771_v53  ;;  %701 = vmatmul.f32.vlgmr.msra.gmra.mxu0 %v1771_v53 }
 0x389   :  { %721 = vmatmul.f32.vlgmr.msra.gmra.mxu1 %v1771_v53  ;;  %937 = vmatpush.msrb.mxu3 %v1718_v46  ;;  %v746_v46 = vrot.slane %v1030_v43, 1 }
 0x38b   :  { %938 = vmatpush.msrb.mxu3 %v1721_v55 }
 0x38d   :  { %939 = vmatpush.msrb.mxu3 %v1724_v39 }
 0x38f   :  { %940 = vmatpush.msrb.mxu3 %v1727_v50 }
 0x391   :  { %941 = vmatpush.msrb.mxu3 %v1730_v0 }
 0x393   :  { %942 = vmatpush.msrb.mxu3 %v1733_v3 }
 0x395   :  { %943 = vmatpush.msrb.mxu3 %v1736_v6 }
 0x397   :  { %944 = vmatpush.msrb.mxu3 %v1739_v9 }
 0x399   :  { %945 = vmatpush.msrb.mxu3 %v1742_v12 }
 0x39b   :  { %946 = vmatpush.msrb.mxu3 %v1745_v15 }
 0x39d   :  { %947 = vmatpush.msrb.mxu3 %v1748_v18 }
 0x39f   :  { %948 = vmatpush.msrb.mxu3 %v1751_v21 }
 0x3a1   :  { %949 = vmatpush.msrb.mxu3 %v1754_v24 }
 0x3a3   :  { %950 = vmatpush.msrb.mxu3 %v1757_v27 }
 0x3a5   :  { %951 = vmatpush.msrb.mxu3 %v1760_v30 }
 0x3a7   :  { %952 = vmatpush.msrb.mxu3 %v1763_v33 }
 0x405   :  { %v702_v55 = vpop.f32.mrf.mxu0 }
 0x406   :  { %v748_v39 = vadd.f32 %v746_v46, %v702_v55  ;;  %v722_v40 = vpop.f32.mrf.mxu1 }
 0x407   :  { %v768_v35 = vadd.f32 %v1802_v62, %v722_v40 }
 0x408   :  { %v1032_v50 = vmul.f32 -1.442695, %v748_v39 }
 0x40a   :  { %1093 = vpow2.f32 %v1032_v50 }
 0x40b   :  { %v682_v0 = vpop.f32.mrf.mxu3 }
 0x40c   :  { %v725_v3 = vadd.f32 %v1030_v43, %v682_v0 }
 0x40e   :  { %v1031_v6 = vmul.f32 -1.442695, %v725_v3  ;;  %v886_v3 = vrot.slane %v1033_v42, 2 }
 0x410   :  { %v1094_v9 = vpop.eup %1093  ;;  %1095 = vpow2.f32 %v1031_v6 }
 0x411   :  { %v752_v12 = vadd.f32 1.0, %v1094_v9 }
 0x413   :  { %1097 = vrcp.f32 %v752_v12  ;;  %v764_v51 = vand.u32 2147483648, %v752_v12  ;;  %vm758_vm13 = vweird.f32 %v752_v12  ;;  %v762_v54 = vand.u32 2147483647, %v752_v12 }
 0x415   :  { %v765_v56 = vor.u32 1.1754944e-38, %v764_v51  ;;  %vm763_vm15 = vcmp.eq.f32.partialorder %v762_v54, 8.507059e+37 }
 0x416   :  { %v1096_v15 = vpop.eup %1095 }
 0x417   :  { %v729_v18 = vadd.f32 1.0, %v1096_v15 }
 0x419   :  { %1099 = vrcp.f32 %v729_v18  ;;  %v1098_v21 = vpop.eup %1097  ;;  %v741_v32 = vand.u32 2147483648, %v729_v18  ;;  %v739_v34 = vand.u32 2147483647, %v729_v18  ;;  %vm735_vm9 = vweird.f32 %v729_v18 }
 0x41a   :  { %v754_v24 = vmul.f32 %v1098_v21, %v752_v12  ;;  %vm759_vm12 = vweird.f32 %v1098_v21 }
 0x41b   :  { %v742_v45 = vor.u32 1.1754944e-38, %v741_v32  ;;  %vm740_vm11 = vcmp.eq.f32.partialorder %v739_v34, 8.507059e+37  ;;  %vm760_vm14 = vmor %vm758_vm13, %vm759_vm12 }
 0x41c   :  { %v755_v30 = vsub.f32 1.0, %v754_v24 }
 0x41e   :  { %v756_v37 = vmul.f32 %v1098_v21, %v755_v30 }
 0x41f   :  { %v1100_v27 = vpop.eup %1099 }
 0x420   :  { %v731_v29 = vmul.f32 %v1100_v27, %v729_v18  ;;  %vm736_vm8 = vweird.f32 %v1100_v27  ;;  %v757_v61 = vadd.f32 %v1098_v21, %v756_v37  ;;  %v1036_v37 = vld [vmem:[%s1823_s0 + $0x7] ss:$8 sm:$0x7] }
 0x421   :  { %vm737_vm10 = vmor %vm735_vm9, %vm736_vm8 }
 0x422   :  { %v732_v31 = vsub.f32 1.0, %v731_v29  ;;  %v761_v47 = vsel %vm760_vm14, %v1098_v21, %v757_v61 }
 0x423   :  { %v766_v59 = vsel %vm763_vm15, %v765_v56, %v761_v47 }
 0x424   :  { %v733_v33 = vmul.f32 %v1100_v27, %v732_v31  ;;  %v774_v57 = vsub.f32 1.0, %v766_v59  ;;  %v776_v41 = vmul.f32 %v766_v59, %v1771_v53 }
 0x426   :  { %v734_v44 = vadd.f32 %v1100_v27, %v733_v33 }
 0x428   :  { %v738_v36 = vsel %vm737_vm10, %v1100_v27, %v734_v44 }
 0x429   :  { %v743_v48 = vsel %vm740_vm11, %v742_v45, %v738_v36 }
 0x42a   :  { %v769_v52 = vmul.f32 %v768_v35, %v743_v48 }
 0x42c   :  { %v772_v49 = vadd.f32 %v770_v58, %v769_v52  ;;  %v978_v58 = vrot.slane %v1036_v37, 1 }
 0x42e   :  { %1101 = vtanh.f32 %v772_v49 }
 0x434   :  { %v1102_v38 = vpop.eup %1101 }
 0x435   :  { %v775_v60 = vmul.f32 %v1102_v38, %v774_v57 }
 0x437   :  { %v777_v63 = vadd.f32 %v776_v41, %v775_v60 }
 0x439   :  { %778 = vst [vmem:[%s1827_s4 + $0x5] sm:$0x1] %v777_v63  ;;  %797 = vmatmul.f32.vlgmr.msra.gmra.mxu2 %v777_v63  ;;  %817 = vmatmul.f32.vlgmr.msra.gmra.mxu3 %v777_v63 }
 0x43a   :  { %837 = vmatmul.f32.vlgmr.msrb.gmra.mxu0 %v777_v63 }
 0x4b7   :  { %v838_v43 = vpop.f32.mrf.mxu0 }
 0x4b8   :  { %v884_v50 = vadd.f32 %v1802_v62, %v838_v43 }
 0x4bc   :  { %v798_v2 = vpop.f32.mrf.mxu2  ;;  %v818_v4 = vpop.f32.mrf.mxu3 }
 0x4bd   :  { %v841_v5 = vadd.f32 %v1033_v42, %v798_v2  ;;  %v864_v7 = vadd.f32 %v862_v1, %v818_v4  ;;  %v1002_v1 = vrot.slane %v1036_v37, 2 }
 0x4bf   :  { %v1034_v8 = vmul.f32 -1.442695, %v841_v5  ;;  %v1035_v10 = vmul.f32 -1.442695, %v864_v7 }
 0x4c1   :  { %1103 = vpow2.f32 %v1034_v8 }
 0x4c2   :  { %1105 = vpow2.f32 %v1035_v10 }
 0x4c7   :  { %v1104_v11 = vpop.eup %1103 }
 0x4c8   :  { %v1106_v13 = vpop.eup %1105  ;;  %v845_v14 = vadd.f32 1.0, %v1104_v11 }
 0x4c9   :  { %v868_v16 = vadd.f32 1.0, %v1106_v13 }
 0x4ca   :  { %1107 = vrcp.f32 %v845_v14  ;;  %v857_v25 = vand.u32 2147483648, %v845_v14  ;;  %v855_v53 = vand.u32 2147483647, %v845_v14  ;;  %vm851_vm1 = vweird.f32 %v845_v14 }
 0x4cb   :  { %1109 = vrcp.f32 %v868_v16  ;;  %v880_v15 = vand.u32 2147483648, %v868_v16  ;;  %vm874_vm5 = vweird.f32 %v868_v16  ;;  %v878_v18 = vand.u32 2147483647, %v868_v16 }
 0x4cc   :  { %v858_v39 = vor.u32 1.1754944e-38, %v857_v25  ;;  %vm856_vm3 = vcmp.eq.f32.partialorder %v855_v53, 8.507059e+37 }
 0x4cd   :  { %v881_v27 = vor.u32 1.1754944e-38, %v880_v15  ;;  %vm879_vm7 = vcmp.eq.f32.partialorder %v878_v18, 8.507059e+37 }
 0x4d0   :  { %v1108_v17 = vpop.eup %1107 }
 0x4d1   :  { %v1110_v19 = vpop.eup %1109  ;;  %v847_v20 = vmul.f32 %v1108_v17, %v845_v14  ;;  %vm852_vm0 = vweird.f32 %v1108_v17 }
 0x4d2   :  { %v870_v22 = vmul.f32 %v1110_v19, %v868_v16  ;;  %vm853_vm2 = vmor %vm851_vm1, %vm852_vm0  ;;  %vm875_vm4 = vweird.f32 %v1110_v19 }
 0x4d3   :  { %v848_v23 = vsub.f32 1.0, %v847_v20  ;;  %vm876_vm6 = vmor %vm874_vm5, %vm875_vm4 }
 0x4d4   :  { %v871_v26 = vsub.f32 1.0, %v870_v22 }
 0x4d5   :  { %v849_v28 = vmul.f32 %v1108_v17, %v848_v23 }
 0x4d6   :  { %v872_v46 = vmul.f32 %v1110_v19, %v871_v26 }
 0x4d7   :  { %v850_v55 = vadd.f32 %v1108_v17, %v849_v28 }
 0x4d8   :  { %v873_v9 = vadd.f32 %v1110_v19, %v872_v46 }
 0x4d9   :  { %v854_v0 = vsel %vm853_vm2, %v1108_v17, %v850_v55 }
 0x4da   :  { %v859_v6 = vsel %vm856_vm3, %v858_v39, %v854_v0  ;;  %v877_v24 = vsel %vm876_vm6, %v1110_v19, %v873_v9 }
 0x4db   :  { %v885_v12 = vmul.f32 %v884_v50, %v859_v6  ;;  %v882_v29 = vsel %vm879_vm7, %v881_v27, %v877_v24 }
 0x4dc   :  { %v890_v30 = vsub.f32 1.0, %v882_v29  ;;  %v892_v33 = vmul.f32 %v882_v29, %v777_v63 }
 0x4dd   :  { %v888_v21 = vadd.f32 %v886_v3, %v885_v12 }
 0x4df   :  { %1111 = vtanh.f32 %v888_v21 }
 0x4e5   :  { %v1112_v31 = vpop.eup %1111 }
 0x4e6   :  { %v891_v32 = vmul.f32 %v1112_v31, %v890_v30 }
 0x4e8   :  { %v893_v34 = vadd.f32 %v892_v33, %v891_v32 }
 0x4ea   :  { %894 = vst [vmem:[%s1827_s4 + $0x6] sm:$0x1] %v893_v34  ;;  %913 = vmatmul.f32.vlgmr.msrb.gmra.mxu1 %v893_v34  ;;  %933 = vmatmul.f32.vlgmr.msrb.gmra.mxu2 %v893_v34 }
 0x4eb   :  { %953 = vmatmul.f32.vlgmr.msrb.gmra.mxu3 %v893_v34 }
 0x567   :  { %v914_v40 = vpop.f32.mrf.mxu1 }
 0x568   :  { %v957_v44 = vadd.f32 %v1036_v37, %v914_v40 }
 0x56a   :  { %v1037_v45 = vmul.f32 -1.442695, %v957_v44 }
 0x56c   :  { %1113 = vpow2.f32 %v1037_v45 }
 0x56d   :  { %v934_v35 = vpop.f32.mrf.mxu2 }
 0x56e   :  { %v980_v36 = vadd.f32 %v978_v58, %v934_v35  ;;  %v954_v41 = vpop.f32.mrf.mxu3 }
 0x56f   :  { %v1000_v7 = vadd.f32 %v1802_v62, %v954_v41 }
 0x570   :  { %v1038_v61 = vmul.f32 -1.442695, %v980_v36 }
 0x572   :  { %v1114_v48 = vpop.eup %1113  ;;  %1115 = vpow2.f32 %v1038_v61 }
 0x573   :  { %v961_v51 = vadd.f32 1.0, %v1114_v48 }
 0x575   :  { %1117 = vrcp.f32 %v961_v51  ;;  %v973_v59 = vand.u32 2147483648, %v961_v51  ;;  %v971_v38 = vand.u32 2147483647, %v961_v51  ;;  %vm967_vm9 = vweird.f32 %v961_v51 }
 0x577   :  { %v974_v2 = vor.u32 1.1754944e-38, %v973_v59  ;;  %vm972_vm11 = vcmp.eq.f32.partialorder %v971_v38, 8.507059e+37 }
 0x578   :  { %v1116_v52 = vpop.eup %1115 }
 0x579   :  { %v984_v54 = vadd.f32 1.0, %v1116_v52 }
 0x57b   :  { %v1118_v49 = vpop.eup %1117  ;;  %1119 = vrcp.f32 %v984_v54  ;;  %v996_v11 = vand.u32 2147483648, %v984_v54  ;;  %v994_v14 = vand.u32 2147483647, %v984_v54  ;;  %vm990_vm13 = vweird.f32 %v984_v54 }
 0x57c   :  { %v963_v47 = vmul.f32 %v1118_v49, %v961_v51  ;;  %vm968_vm8 = vweird.f32 %v1118_v49 }
 0x57d   :  { %vm969_vm10 = vmor %vm967_vm9, %vm968_vm8  ;;  %v997_v19 = vor.u32 1.1754944e-38, %v996_v11  ;;  %vm995_vm15 = vcmp.eq.f32.partialorder %v994_v14, 8.507059e+37 }
 0x57e   :  { %v964_v56 = vsub.f32 1.0, %v963_v47 }
 0x580   :  { %v965_v57 = vmul.f32 %v1118_v49, %v964_v56 }
 0x581   :  { %v1120_v60 = vpop.eup %1119 }
 0x582   :  { %v986_v63 = vmul.f32 %v1120_v60, %v984_v54  ;;  %v966_v42 = vadd.f32 %v1118_v49, %v965_v57  ;;  %vm991_vm12 = vweird.f32 %v1120_v60 }
 0x583   :  { %vm992_vm14 = vmor %vm990_vm13, %vm991_vm12 }
 0x584   :  { %v987_v4 = vsub.f32 1.0, %v986_v63  ;;  %v970_v5 = vsel %vm969_vm10, %v1118_v49, %v966_v42 }
 0x585   :  { %v975_v8 = vsel %vm972_vm11, %v974_v2, %v970_v5 }
 0x586   :  { %v988_v10 = vmul.f32 %v1120_v60, %v987_v4  ;;  %v1001_v13 = vmul.f32 %v1000_v7, %v975_v8 }
 0x588   :  { %v989_v16 = vadd.f32 %v1120_v60, %v988_v10  ;;  %v1004_v17 = vadd.f32 %v1002_v1, %v1001_v13 }
 0x58a   :  { %v993_v20 = vsel %vm992_vm14, %v1120_v60, %v989_v16  ;;  %1121 = vtanh.f32 %v1004_v17 }
 0x58b   :  { %v998_v22 = vsel %vm995_vm15, %v997_v19, %v993_v20 }
 0x58c   :  { %v1006_v23 = vsub.f32 1.0, %v998_v22  ;;  %v1008_v28 = vmul.f32 %v998_v22, %v893_v34 }
 0x590   :  { %v1122_v25 = vpop.eup %1121 }
 0x591   :  { %v1007_v26 = vmul.f32 %v1122_v25, %v1006_v23 }
 0x593   :  { %v1009_v62 = vadd.f32 %v1008_v28, %v1007_v26 }
 0x595   :  { %1010 = vst [vmem:[%s1827_s4 + $0x7] sm:$0x1] %v1009_v62 }
 0x596   :  { %1015 = vsyncpa [#allocation3], 1 }

</bundles_post_ra>
